<compile_context>
chip_gen: v7x
topology: tpu7x:2x2x1
jax: 0.10.0
libtpu: 0.0.40
codegen_flags: <defaults>
</compile_context>

<pallas_src>
import functools

import numpy as np
import jax
import jax.numpy as jnp
from jax.experimental import pallas as pl
from jax.experimental.pallas import tpu as pltpu

NEG_SLOPE = 0.01  # torch.nn.LeakyReLU default


def _leaky(x):
    return jnp.where(x >= 0, x, NEG_SLOPE * x)


# ----------------------------------------------------------------------------
# Fused ConvBlock kernel.  One grid step == `ips` images stacked on the M axis.
# ----------------------------------------------------------------------------
def _convblock_kernel(x_ref, w0_ref, b0_ref, wres_ref, bres_ref,
                      selr_ref, selc_ref, o_ref,
                      *, cnum, h_in, w_in, ips, pb, lout):
    C = cnum
    Ho0, Wo0 = h_in - 2, w_in - 2          # conv0 "valid" output per image (14,14)
    Wd = Wo0 - 2                           # dense col-max width (12)
    Hp = (Ho0 - 3) // 2 + 1                # pooled H (6)
    Wp = (Wo0 - 3) // 2 + 1                # pooled W (6)
    HT = ips * h_in                        # stacked input height
    MT = HT - 2                            # "tall image" conv0 output height
    MA = ips * pb                          # resblock layout: pb rows per image

    xs = x_ref[...]                        # (HT, w_in*cin)

    # -------- conv0: dx taps folded into banded weights -> 3 matmuls (one per dy).
    # Rows whose 3-row window straddles an image boundary are garbage but never used.
    acc = jnp.zeros((MT, Wo0 * C), jnp.float32)
    for dy in range(3):
        acc = acc + jnp.dot(xs[dy:dy + MT, :], w0_ref[dy],
                            preferred_element_type=jnp.float32)
    y0 = acc + b0_ref[...]                                                    # (MT, Wo0*C)

    # -------- maxpool 3x3 stride 2 --------
    # 3 row maxes + one-hot row-select matmul (also drops boundary-garbage rows and
    # zero-fills the pb-rows-per-image layout), then 3 lane-shifted col maxes + one-hot
    # col-select matmul.
    rm = jnp.maximum(jnp.maximum(y0[0:MT - 2], y0[1:MT - 1]), y0[2:MT])       # (MT-2, Wo0*C)
    rs = jnp.dot(selr_ref[...], rm, preferred_element_type=jnp.float32)       # (MA, Wo0*C)
    cm = jnp.maximum(jnp.maximum(rs[:, 0:Wd * C], rs[:, C:(Wd + 1) * C]),
                     rs[:, 2 * C:(Wd + 2) * C])                               # (MA, Wd*C)
    y = jnp.dot(cm, selc_ref[...], preferred_element_type=jnp.float32)        # (MA, Wp*C)

    # Rows r in [Hp, pb) of each per-image block are padding/garbage rows.  Zeroing
    # them makes a plain +/-1 row shift implement per-image "same" padding entirely in
    # registers (no VMEM pad scratch).
    ridx = jax.lax.broadcasted_iota(jnp.int32, (MA, 1), 0)
    row_ok = (ridx % pb < Hp).astype(jnp.float32)
    zrow = jnp.zeros((1, Wp * C), jnp.float32)

    def conv_same(v, k):
        # v: (MA, Wp*C).  Column "same" padding is folded into the banded weights;
        # row padding comes from the masked pad rows / zrow borders.
        vm = v * row_ok
        vp = jnp.concatenate([zrow, vm, zrow], axis=0)          # (MA+2, Wp*C)
        a = jnp.zeros((MA, Wp * C), jnp.float32)
        for dy in range(3):
            a = a + jnp.dot(vp[dy:dy + MA, :], wres_ref[k * 3 + dy],
                            preferred_element_type=jnp.float32)
        return a + bres_ref[k]

    # -------- two ResBlocks: y = y + conv2(leaky(conv1(leaky(y)))) --------
    for blk in range(2):
        h = conv_same(_leaky(y), 2 * blk)
        h = conv_same(_leaky(h), 2 * blk + 1)
        y = y + h

    # Lane-dense writeback: pad lanes up to a multiple of 128 so the store is unmasked;
    # the wrapper slices the real Wp*C lanes back out.
    if lout > Wp * C:
        y = jnp.concatenate(
            [y, jnp.zeros((MA, lout - Wp * C), jnp.float32)], axis=1)
    o_ref[0] = y.astype(o_ref.dtype)


# ----------------------------------------------------------------------------
# One-time parameter preprocessing (outside the forward path; cache and reuse)
# ----------------------------------------------------------------------------
def _banded_weights(w_hwio, n_out, pad):
    """(3,3,Ci,Co) -> (3, n_in*Ci, n_out*Co) banded per-kernel-row weights.

    Output column group j reads input column groups j+dx-pad (dx=0..2, clipped), i.e.
    the horizontal conv taps (and, for pad=1, the horizontal zero padding) are folded
    into the weight matrix."""
    kh, kw, ci, co = w_hwio.shape
    n_in = n_out + (kw - 1) - 2 * pad
    taps = []
    for dy in range(kh):
        acc = jnp.zeros((n_in * ci, n_out * co), w_hwio.dtype)
        for dx in range(kw):
            sel = np.zeros((n_in, n_out), np.float32)
            for j in range(n_out):
                p = j + dx - pad
                if 0 <= p < n_in:
                    sel[p, j] = 1.0
            blk = jnp.einsum('pq,io->piqo', jnp.asarray(sel, w_hwio.dtype),
                             w_hwio[dy, dx]).reshape(n_in * ci, n_out * co)
            acc = acc + blk
        taps.append(acc)
    return jnp.stack(taps, axis=0)


def _make_selectors(ips, h_in, pb, hp, wd, wp, c):
    # Row selector: pooled row j of image b = row-max at tall-output row b*h_in + 2j.
    # Rows [hp, pb) of each image block are left all-zero (become zero pad rows).
    selr = np.zeros((ips * pb, ips * h_in - 4), np.float32)
    for b in range(ips):
        for j in range(hp):
            selr[b * pb + j, b * h_in + 2 * j] = 1.0
    selc = np.zeros((wd * c, wp * c), np.float32)
    for j in range(wp):
        for ci in range(c):
            selc[2 * j * c + ci, j * c + ci] = 1.0
    return jnp.asarray(selr), jnp.asarray(selc)


def _choose_imgs_per_step(batch, max_imgs_per_step=16):
    # Fold as many images as possible per grid step (fills the MXU M dim, amortizes
    # per-step overhead); when the batch is big enough keep the grid length even so
    # both v7x TensorCores get work.
    if batch >= 4 and batch % 2 == 0 and batch // 2 <= max_imgs_per_step:
        return batch // 2
    best = 1
    for d in range(1, min(batch, max_imgs_per_step) + 1):
        if batch % d == 0:
            best = d
    return best


def prepare_convblock_params(params, batch, height, width, imgs_per_step=None):
    """Build the kernel operands once at parameter-setup time."""
    C = params["w0"].shape[-1]
    Ho0, Wo0 = height - 2, width - 2
    Wd = Wo0 - 2
    Hp = (Ho0 - 3) // 2 + 1
    Wp = (Wo0 - 3) // 2 + 1
    ips = imgs_per_step or _choose_imgs_per_step(batch)
    assert batch % ips == 0, (batch, ips)
    pb = max(8, -(-(Hp + 2) // 8) * 8)                 # rows per image in resblock layout

    w0b = _banded_weights(params["w0"], Wo0, pad=0)                     # (3, W*Cin, Wo0*C)
    b0 = jnp.tile(params["b0"], Wo0).reshape(1, Wo0 * C)
    wres = jnp.concatenate(
        [_banded_weights(params[k], Wp, pad=1)
         for k in ("w1a", "w1b", "w2a", "w2b")], axis=0)                # (12, Wp*C, Wp*C)
    bres = jnp.stack([jnp.tile(params[k], Wp)
                      for k in ("b1a", "b1b", "b2a", "b2b")]).reshape(4, 1, Wp * C)
    selr, selc = _make_selectors(ips, height, pb, Hp, Wd, Wp, C)
    return {"w0b": w0b, "b0": b0, "wres": wres, "bres": bres,
            "selr": selr, "selc": selc}


# ----------------------------------------------------------------------------
# Forward wrapper
# ----------------------------------------------------------------------------
def conv_block_forward(x_nchw, prep):
    N, Cin, H, W = x_nchw.shape
    Ho0, Wo0 = H - 2, W - 2
    Hp = (Ho0 - 3) // 2 + 1
    Wp = (Wo0 - 3) // 2 + 1
    C = prep["b0"].shape[-1] // Wo0
    ips = (prep["selr"].shape[1] + 4) // H
    pb = prep["selr"].shape[0] // ips
    assert N % ips == 0, (N, ips)
    G = N // ips
    MA = ips * pb
    LOUT = -(-(Wp * C) // 128) * 128

    # NCHW -> NHWC -> (N*H, W*Cin): channels on the lane axis, images stacked on rows.
    x2d = jnp.transpose(x_nchw, (0, 2, 3, 1)).reshape(N * H, W * Cin)

    kernel = functools.partial(_convblock_kernel, cnum=C, h_in=H, w_in=W,
                               ips=ips, pb=pb, lout=LOUT)

    # NOTE: the weight/selector inputs are grid-invariant; with a long grid they could
    # be single-buffered (pipeline_mode=pl.Buffered(1)), but at ~0.3 MB resident VMEM
    # that is immaterial here.
    out = pl.pallas_call(
        kernel,
        out_shape=jax.ShapeDtypeStruct((G, MA, LOUT), jnp.float32),
        grid=(G,),
        in_specs=[
            pl.BlockSpec((ips * H, W * Cin), lambda n: (n, 0)),
            pl.BlockSpec(prep["w0b"].shape, lambda n: (0, 0, 0)),
            pl.BlockSpec(prep["b0"].shape, lambda n: (0, 0)),
            pl.BlockSpec(prep["wres"].shape, lambda n: (0, 0, 0)),
            pl.BlockSpec(prep["bres"].shape, lambda n: (0, 0, 0)),
            pl.BlockSpec(prep["selr"].shape, lambda n: (0, 0)),
            pl.BlockSpec(prep["selc"].shape, lambda n: (0, 0)),
        ],
        out_specs=pl.BlockSpec((1, MA, LOUT), lambda n: (n, 0, 0)),
        compiler_params=pltpu.CompilerParams(dimension_semantics=("parallel",)),
    )(x2d, prep["w0b"], prep["b0"], prep["wres"], prep["bres"],
      prep["selr"], prep["selc"])

    out = out.reshape(G, ips, pb, LOUT)[:, :, :Hp, :Wp * C]
    out = out.reshape(N, Hp, Wp, C)
    return jnp.transpose(out, (0, 3, 1, 2))                              # NHWC -> NCHW


# ----------------------------------------------------------------------------
# Pure-JAX reference (mirrors PyTorch semantics) for validation
# ----------------------------------------------------------------------------
def _conv_ref(x_nchw, w_hwio, b, pad):
    w_oihw = jnp.transpose(w_hwio, (3, 2, 0, 1))
    out = jax.lax.conv_general_dilated(
        x_nchw, w_oihw, window_strides=(1, 1),
        padding=[(pad, pad), (pad, pad)],
        dimension_numbers=("NCHW", "OIHW", "NCHW"))
    return out + b[None, :, None, None]


def reference_forward(x, p):
    y = _conv_ref(x, p["w0"], p["b0"], 0)
    y = jax.lax.reduce_window(y, -jnp.inf, jax.lax.max,
                              (1, 1, 3, 3), (1, 1, 2, 2), "VALID")

    def res(y, wa, ba, wb, bb):
        h = _conv_ref(_leaky(y), wa, ba, 1)
        h = _conv_ref(_leaky(h), wb, bb, 1)
        return h + y

    y = res(y, p["w1a"], p["b1a"], p["w1b"], p["b1b"])
    y = res(y, p["w2a"], p["b2a"], p["w2b"], p["b2b"])
    return y


# ----------------------------------------------------------------------------
def _init_conv(key, cin, cout):
    kw, kb = jax.random.split(key)
    fan_in = cin * 3 * 3
    bound = 1.0 / np.sqrt(fan_in)
    # weights stored HWIO = (3, 3, Cin, Cout); deterministic synthetic init.
    w = jax.random.uniform(kw, (3, 3, cin, cout), jnp.float32, -bound, bound)
    b = jax.random.uniform(kb, (cout,), jnp.float32, -bound, bound)
    return w, b


if __name__ == "__main__":
    key = jax.random.PRNGKey(0)
    N, Cin, H, W = 2, 4, 16, 16
    Cnum = 8  # num_channel

    keys = jax.random.split(key, 6)
    x = jax.random.normal(keys[0], (N, Cin, H, W), jnp.float32)

    params = {}
    params["w0"], params["b0"] = _init_conv(keys[1], Cin, Cnum)
    params["w1a"], params["b1a"] = _init_conv(keys[2], Cnum, Cnum)
    params["w1b"], params["b1b"] = _init_conv(keys[3], Cnum, Cnum)
    params["w2a"], params["b2a"] = _init_conv(keys[4], Cnum, Cnum)
    params["w2b"], params["b2b"] = _init_conv(keys[5], Cnum, Cnum)

    # One-time preprocessing (banded weights, tiled biases, pooling selectors).
    prep = prepare_convblock_params(params, N, H, W)

    fwd = jax.jit(conv_block_forward)
    out = jax.block_until_ready(fwd(x, prep))

    ref = jax.block_until_ready(reference_forward(x, params))

    assert out.shape == ref.shape, (out.shape, ref.shape)
    assert jnp.allclose(out, ref, atol=1e-4, rtol=1e-4), (
        float(jnp.max(jnp.abs(out - ref))))

    print("KERNEL_OK")
</pallas_src>

<mosaic_0001>
module attributes {stable_mosaic.version = 11 : i64} {
  func.func @_convblock_kernel(%arg0: i32, %arg1: memref<32x64xf32, #tpu.memory_space<vmem>>, %arg2: memref<3x64x112xf32, #tpu.memory_space<vmem>>, %arg3: memref<1x112xf32, #tpu.memory_space<vmem>>, %arg4: memref<12x48x48xf32, #tpu.memory_space<vmem>>, %arg5: memref<4x1x48xf32, #tpu.memory_space<vmem>>, %arg6: memref<16x28xf32, #tpu.memory_space<vmem>>, %arg7: memref<96x48xf32, #tpu.memory_space<vmem>>, %arg8: memref<1x16x128xf32, #tpu.memory_space<vmem>>) attributes {dimension_semantics = [#tpu.dimension_semantics<parallel>], iteration_bounds = array<i64: 1>, scalar_prefetch = 0 : i64, scratch_operands = 0 : i64, tpu.core_type = #tpu.core_type<tc>, window_params = [{transform_indices = @transform_0, window_bounds = array<i64: 32, 64>}, {pipeline_mode = #tpu.pipeline_mode<synchronous>, transform_indices = @transform_1, window_bounds = array<i64: 3, 64, 112>}, {pipeline_mode = #tpu.pipeline_mode<synchronous>, transform_indices = @transform_2, window_bounds = array<i64: 1, 112>}, {pipeline_mode = #tpu.pipeline_mode<synchronous>, transform_indices = @transform_3, window_bounds = array<i64: 12, 48, 48>}, {pipeline_mode = #tpu.pipeline_mode<synchronous>, transform_indices = @transform_4, window_bounds = array<i64: 4, 1, 48>}, {pipeline_mode = #tpu.pipeline_mode<synchronous>, transform_indices = @transform_5, window_bounds = array<i64: 16, 28>}, {pipeline_mode = #tpu.pipeline_mode<synchronous>, transform_indices = @transform_6, window_bounds = array<i64: 96, 48>}, {transform_indices = @transform_7, window_bounds = array<i64: 1, 16, 128>}]} {
    %c0 = arith.constant 0 : index
    %c0_0 = arith.constant 0 : index
    %0 = vector.load %arg1[%c0, %c0_0] : memref<32x64xf32, #tpu.memory_space<vmem>>, vector<32x64xf32>
    %cst = arith.constant 0.000000e+00 : f32
    %1 = vector.broadcast %cst : f32 to vector<30x112xf32>
    %2 = vector.extract_strided_slice %0 {offsets = [0, 0], sizes = [30, 64], strides = [1, 1]} : vector<32x64xf32> to vector<30x64xf32>
    %c0_1 = arith.constant 0 : index
    %c0_2 = arith.constant 0 : index
    %c0_3 = arith.constant 0 : index
    %3 = vector.load %arg2[%c0_1, %c0_2, %c0_3] : memref<3x64x112xf32, #tpu.memory_space<vmem>>, vector<1x64x112xf32>
    %4 = vector.shape_cast %3 : vector<1x64x112xf32> to vector<64x112xf32>
    %cst_4 = arith.constant dense<0.000000e+00> : vector<30x112xf32>
    %5 = tpu.matmul %2, %4, %cst_4 {dimension_numbers = #tpu.dot_dimension_numbers<[1], [0], [0], [1], [0, 0, 1, 1], [], []>} : vector<30x64xf32>, vector<64x112xf32>, vector<30x112xf32> -> vector<30x112xf32>
    %6 = arith.addf %1, %5 : vector<30x112xf32>
    %7 = vector.extract_strided_slice %0 {offsets = [1, 0], sizes = [30, 64], strides = [1, 1]} : vector<32x64xf32> to vector<30x64xf32>
    %c1 = arith.constant 1 : index
    %c0_5 = arith.constant 0 : index
    %c0_6 = arith.constant 0 : index
    %8 = vector.load %arg2[%c1, %c0_5, %c0_6] : memref<3x64x112xf32, #tpu.memory_space<vmem>>, vector<1x64x112xf32>
    %9 = vector.shape_cast %8 : vector<1x64x112xf32> to vector<64x112xf32>
    %cst_7 = arith.constant dense<0.000000e+00> : vector<30x112xf32>
    %10 = tpu.matmul %7, %9, %cst_7 {dimension_numbers = #tpu.dot_dimension_numbers<[1], [0], [0], [1], [0, 0, 1, 1], [], []>} : vector<30x64xf32>, vector<64x112xf32>, vector<30x112xf32> -> vector<30x112xf32>
    %11 = arith.addf %6, %10 : vector<30x112xf32>
    %12 = vector.extract_strided_slice %0 {offsets = [2, 0], sizes = [30, 64], strides = [1, 1]} : vector<32x64xf32> to vector<30x64xf32>
    %c2 = arith.constant 2 : index
    %c0_8 = arith.constant 0 : index
    %c0_9 = arith.constant 0 : index
    %13 = vector.load %arg2[%c2, %c0_8, %c0_9] : memref<3x64x112xf32, #tpu.memory_space<vmem>>, vector<1x64x112xf32>
    %14 = vector.shape_cast %13 : vector<1x64x112xf32> to vector<64x112xf32>
    %cst_10 = arith.constant dense<0.000000e+00> : vector<30x112xf32>
    %15 = tpu.matmul %12, %14, %cst_10 {dimension_numbers = #tpu.dot_dimension_numbers<[1], [0], [0], [1], [0, 0, 1, 1], [], []>} : vector<30x64xf32>, vector<64x112xf32>, vector<30x112xf32> -> vector<30x112xf32>
    %16 = arith.addf %11, %15 : vector<30x112xf32>
    %c0_11 = arith.constant 0 : index
    %c0_12 = arith.constant 0 : index
    %17 = vector.load %arg3[%c0_11, %c0_12] : memref<1x112xf32, #tpu.memory_space<vmem>>, vector<1x112xf32>
    %18 = vector.broadcast %17 : vector<1x112xf32> to vector<30x112xf32>
    %19 = arith.addf %16, %18 : vector<30x112xf32>
    %20 = vector.extract_strided_slice %19 {offsets = [0, 0], sizes = [28, 112], strides = [1, 1]} : vector<30x112xf32> to vector<28x112xf32>
    %21 = vector.extract_strided_slice %19 {offsets = [1, 0], sizes = [28, 112], strides = [1, 1]} : vector<30x112xf32> to vector<28x112xf32>
    %22 = arith.maximumf %20, %21 : vector<28x112xf32>
    %23 = vector.extract_strided_slice %19 {offsets = [2, 0], sizes = [28, 112], strides = [1, 1]} : vector<30x112xf32> to vector<28x112xf32>
    %24 = arith.maximumf %22, %23 : vector<28x112xf32>
    %c0_13 = arith.constant 0 : index
    %c0_14 = arith.constant 0 : index
    %25 = vector.load %arg6[%c0_13, %c0_14] : memref<16x28xf32, #tpu.memory_space<vmem>>, vector<16x28xf32>
    %cst_15 = arith.constant dense<0.000000e+00> : vector<16x112xf32>
    %26 = tpu.matmul %25, %24, %cst_15 {dimension_numbers = #tpu.dot_dimension_numbers<[1], [0], [0], [1], [0, 0, 1, 1], [], []>} : vector<16x28xf32>, vector<28x112xf32>, vector<16x112xf32> -> vector<16x112xf32>
    %27 = vector.extract_strided_slice %26 {offsets = [0, 0], sizes = [16, 96], strides = [1, 1]} : vector<16x112xf32> to vector<16x96xf32>
    %28 = vector.extract_strided_slice %26 {offsets = [0, 8], sizes = [16, 96], strides = [1, 1]} : vector<16x112xf32> to vector<16x96xf32>
    %29 = arith.maximumf %27, %28 : vector<16x96xf32>
    %30 = vector.extract_strided_slice %26 {offsets = [0, 16], sizes = [16, 96], strides = [1, 1]} : vector<16x112xf32> to vector<16x96xf32>
    %31 = arith.maximumf %29, %30 : vector<16x96xf32>
    %c0_16 = arith.constant 0 : index
    %c0_17 = arith.constant 0 : index
    %32 = vector.load %arg7[%c0_16, %c0_17] : memref<96x48xf32, #tpu.memory_space<vmem>>, vector<96x48xf32>
    %cst_18 = arith.constant dense<0.000000e+00> : vector<16x48xf32>
    %33 = tpu.matmul %31, %32, %cst_18 {dimension_numbers = #tpu.dot_dimension_numbers<[1], [0], [0], [1], [0, 0, 1, 1], [], []>} : vector<16x96xf32>, vector<96x48xf32>, vector<16x48xf32> -> vector<16x48xf32>
    %34 = tpu.iota {dimensions = array<i32: 0>} : vector<16x1xi32>
    %c8_i32 = arith.constant 8 : i32
    %c0_i32 = arith.constant 0 : i32
    %35 = arith.cmpi eq, %c8_i32, %c0_i32 : i32
    %c1_i32 = arith.constant 1 : i32
    %36 = arith.select %35, %c1_i32, %c8_i32 : i32
    %37 = vector.broadcast %36 : i32 to vector<16x1xi32>
    %38 = arith.remsi %34, %37 : vector<16x1xi32>
    %c0_i32_19 = arith.constant 0 : i32
    %39 = vector.broadcast %c0_i32_19 : i32 to vector<16x1xi32>
    %40 = arith.cmpi ne, %38, %39 : vector<16x1xi32>
    %c0_i32_20 = arith.constant 0 : i32
    %41 = vector.broadcast %c0_i32_20 : i32 to vector<16x1xi32>
    %42 = arith.cmpi slt, %38, %41 : vector<16x1xi32>
    %c0_i32_21 = arith.constant 0 : i32
    %43 = arith.cmpi slt, %36, %c0_i32_21 : i32
    %44 = vector.broadcast %43 : i1 to vector<16x1xi1>
    %45 = vector.broadcast %44 : vector<16x1xi1> to vector<16x1xi1>
    %46 = arith.xori %42, %45 : vector<16x1xi1>
    %47 = arith.andi %46, %40 : vector<16x1xi1>
    %48 = vector.broadcast %36 : i32 to vector<16x1xi32>
    %49 = arith.addi %38, %48 : vector<16x1xi32>
    %50 = arith.select %47, %49, %38 : vector<16x1xi1>, vector<16x1xi32>
    %c6_i32 = arith.constant 6 : i32
    %51 = vector.broadcast %c6_i32 : i32 to vector<16x1xi32>
    %52 = arith.cmpi slt, %50, %51 : vector<16x1xi32>
    %53 = arith.extui %52 : vector<16x1xi1> to vector<16x1xi32>
    %54 = arith.sitofp %53 : vector<16x1xi32> to vector<16x1xf32>
    %cst_22 = arith.constant 0.000000e+00 : f32
    %55 = vector.broadcast %cst_22 : f32 to vector<1x48xf32>
    %cst_23 = arith.constant 0.000000e+00 : f32
    %56 = vector.broadcast %cst_23 : f32 to vector<16x48xf32>
    %57 = arith.cmpf oge, %33, %56 : vector<16x48xf32>
    %cst_24 = arith.constant 0.00999999977 : f32
    %58 = vector.broadcast %cst_24 : f32 to vector<16x48xf32>
    %59 = arith.mulf %58, %33 : vector<16x48xf32>
    %60 = arith.select %57, %33, %59 : vector<16x48xi1>, vector<16x48xf32>
    %61 = vector.broadcast %54 : vector<16x1xf32> to vector<16x48xf32>
    %62 = arith.mulf %60, %61 : vector<16x48xf32>
    %63 = tpu.concatenate %55, %62, %55 in 0 : vector<1x48xf32>, vector<16x48xf32>, vector<1x48xf32> -> vector<18x48xf32>
    %cst_25 = arith.constant 0.000000e+00 : f32
    %64 = vector.broadcast %cst_25 : f32 to vector<16x48xf32>
    %65 = vector.extract_strided_slice %63 {offsets = [0, 0], sizes = [16, 48], strides = [1, 1]} : vector<18x48xf32> to vector<16x48xf32>
    %c0_26 = arith.constant 0 : index
    %c0_27 = arith.constant 0 : index
    %c0_28 = arith.constant 0 : index
    %66 = vector.load %arg4[%c0_26, %c0_27, %c0_28] : memref<12x48x48xf32, #tpu.memory_space<vmem>>, vector<1x48x48xf32>
    %67 = vector.shape_cast %66 : vector<1x48x48xf32> to vector<48x48xf32>
    %cst_29 = arith.constant dense<0.000000e+00> : vector<16x48xf32>
    %68 = tpu.matmul %65, %67, %cst_29 {dimension_numbers = #tpu.dot_dimension_numbers<[1], [0], [0], [1], [0, 0, 1, 1], [], []>} : vector<16x48xf32>, vector<48x48xf32>, vector<16x48xf32> -> vector<16x48xf32>
    %69 = arith.addf %64, %68 : vector<16x48xf32>
    %70 = vector.extract_strided_slice %63 {offsets = [1, 0], sizes = [16, 48], strides = [1, 1]} : vector<18x48xf32> to vector<16x48xf32>
    %c1_30 = arith.constant 1 : index
    %c0_31 = arith.constant 0 : index
    %c0_32 = arith.constant 0 : index
    %71 = vector.load %arg4[%c1_30, %c0_31, %c0_32] : memref<12x48x48xf32, #tpu.memory_space<vmem>>, vector<1x48x48xf32>
    %72 = vector.shape_cast %71 : vector<1x48x48xf32> to vector<48x48xf32>
    %cst_33 = arith.constant dense<0.000000e+00> : vector<16x48xf32>
    %73 = tpu.matmul %70, %72, %cst_33 {dimension_numbers = #tpu.dot_dimension_numbers<[1], [0], [0], [1], [0, 0, 1, 1], [], []>} : vector<16x48xf32>, vector<48x48xf32>, vector<16x48xf32> -> vector<16x48xf32>
    %74 = arith.addf %69, %73 : vector<16x48xf32>
    %75 = vector.extract_strided_slice %63 {offsets = [2, 0], sizes = [16, 48], strides = [1, 1]} : vector<18x48xf32> to vector<16x48xf32>
    %c2_34 = arith.constant 2 : index
    %c0_35 = arith.constant 0 : index
    %c0_36 = arith.constant 0 : index
    %76 = vector.load %arg4[%c2_34, %c0_35, %c0_36] : memref<12x48x48xf32, #tpu.memory_space<vmem>>, vector<1x48x48xf32>
    %77 = vector.shape_cast %76 : vector<1x48x48xf32> to vector<48x48xf32>
    %cst_37 = arith.constant dense<0.000000e+00> : vector<16x48xf32>
    %78 = tpu.matmul %75, %77, %cst_37 {dimension_numbers = #tpu.dot_dimension_numbers<[1], [0], [0], [1], [0, 0, 1, 1], [], []>} : vector<16x48xf32>, vector<48x48xf32>, vector<16x48xf32> -> vector<16x48xf32>
    %79 = arith.addf %74, %78 : vector<16x48xf32>
    %c0_38 = arith.constant 0 : index
    %c0_39 = arith.constant 0 : index
    %c0_40 = arith.constant 0 : index
    %80 = vector.load %arg5[%c0_38, %c0_39, %c0_40] : memref<4x1x48xf32, #tpu.memory_space<vmem>>, vector<1x1x48xf32>
    %81 = vector.shape_cast %80 : vector<1x1x48xf32> to vector<1x48xf32>
    %82 = vector.broadcast %81 : vector<1x48xf32> to vector<16x48xf32>
    %83 = arith.addf %79, %82 : vector<16x48xf32>
    %cst_41 = arith.constant 0.000000e+00 : f32
    %84 = vector.broadcast %cst_41 : f32 to vector<16x48xf32>
    %85 = arith.cmpf oge, %83, %84 : vector<16x48xf32>
    %cst_42 = arith.constant 0.00999999977 : f32
    %86 = vector.broadcast %cst_42 : f32 to vector<16x48xf32>
    %87 = arith.mulf %86, %83 : vector<16x48xf32>
    %88 = arith.select %85, %83, %87 : vector<16x48xi1>, vector<16x48xf32>
    %89 = vector.broadcast %54 : vector<16x1xf32> to vector<16x48xf32>
    %90 = arith.mulf %88, %89 : vector<16x48xf32>
    %91 = tpu.concatenate %55, %90, %55 in 0 : vector<1x48xf32>, vector<16x48xf32>, vector<1x48xf32> -> vector<18x48xf32>
    %cst_43 = arith.constant 0.000000e+00 : f32
    %92 = vector.broadcast %cst_43 : f32 to vector<16x48xf32>
    %93 = vector.extract_strided_slice %91 {offsets = [0, 0], sizes = [16, 48], strides = [1, 1]} : vector<18x48xf32> to vector<16x48xf32>
    %c3 = arith.constant 3 : index
    %c0_44 = arith.constant 0 : index
    %c0_45 = arith.constant 0 : index
    %94 = vector.load %arg4[%c3, %c0_44, %c0_45] : memref<12x48x48xf32, #tpu.memory_space<vmem>>, vector<1x48x48xf32>
    %95 = vector.shape_cast %94 : vector<1x48x48xf32> to vector<48x48xf32>
    %cst_46 = arith.constant dense<0.000000e+00> : vector<16x48xf32>
    %96 = tpu.matmul %93, %95, %cst_46 {dimension_numbers = #tpu.dot_dimension_numbers<[1], [0], [0], [1], [0, 0, 1, 1], [], []>} : vector<16x48xf32>, vector<48x48xf32>, vector<16x48xf32> -> vector<16x48xf32>
    %97 = arith.addf %92, %96 : vector<16x48xf32>
    %98 = vector.extract_strided_slice %91 {offsets = [1, 0], sizes = [16, 48], strides = [1, 1]} : vector<18x48xf32> to vector<16x48xf32>
    %c4 = arith.constant 4 : index
    %c0_47 = arith.constant 0 : index
    %c0_48 = arith.constant 0 : index
    %99 = vector.load %arg4[%c4, %c0_47, %c0_48] : memref<12x48x48xf32, #tpu.memory_space<vmem>>, vector<1x48x48xf32>
    %100 = vector.shape_cast %99 : vector<1x48x48xf32> to vector<48x48xf32>
    %cst_49 = arith.constant dense<0.000000e+00> : vector<16x48xf32>
    %101 = tpu.matmul %98, %100, %cst_49 {dimension_numbers = #tpu.dot_dimension_numbers<[1], [0], [0], [1], [0, 0, 1, 1], [], []>} : vector<16x48xf32>, vector<48x48xf32>, vector<16x48xf32> -> vector<16x48xf32>
    %102 = arith.addf %97, %101 : vector<16x48xf32>
    %103 = vector.extract_strided_slice %91 {offsets = [2, 0], sizes = [16, 48], strides = [1, 1]} : vector<18x48xf32> to vector<16x48xf32>
    %c5 = arith.constant 5 : index
    %c0_50 = arith.constant 0 : index
    %c0_51 = arith.constant 0 : index
    %104 = vector.load %arg4[%c5, %c0_50, %c0_51] : memref<12x48x48xf32, #tpu.memory_space<vmem>>, vector<1x48x48xf32>
    %105 = vector.shape_cast %104 : vector<1x48x48xf32> to vector<48x48xf32>
    %cst_52 = arith.constant dense<0.000000e+00> : vector<16x48xf32>
    %106 = tpu.matmul %103, %105, %cst_52 {dimension_numbers = #tpu.dot_dimension_numbers<[1], [0], [0], [1], [0, 0, 1, 1], [], []>} : vector<16x48xf32>, vector<48x48xf32>, vector<16x48xf32> -> vector<16x48xf32>
    %107 = arith.addf %102, %106 : vector<16x48xf32>
    %c1_53 = arith.constant 1 : index
    %c0_54 = arith.constant 0 : index
    %c0_55 = arith.constant 0 : index
    %108 = vector.load %arg5[%c1_53, %c0_54, %c0_55] : memref<4x1x48xf32, #tpu.memory_space<vmem>>, vector<1x1x48xf32>
    %109 = vector.shape_cast %108 : vector<1x1x48xf32> to vector<1x48xf32>
    %110 = vector.broadcast %109 : vector<1x48xf32> to vector<16x48xf32>
    %111 = arith.addf %107, %110 : vector<16x48xf32>
    %112 = arith.addf %33, %111 : vector<16x48xf32>
    %cst_56 = arith.constant 0.000000e+00 : f32
    %113 = vector.broadcast %cst_56 : f32 to vector<16x48xf32>
    %114 = arith.cmpf oge, %112, %113 : vector<16x48xf32>
    %cst_57 = arith.constant 0.00999999977 : f32
    %115 = vector.broadcast %cst_57 : f32 to vector<16x48xf32>
    %116 = arith.mulf %115, %112 : vector<16x48xf32>
    %117 = arith.select %114, %112, %116 : vector<16x48xi1>, vector<16x48xf32>
    %118 = vector.broadcast %54 : vector<16x1xf32> to vector<16x48xf32>
    %119 = arith.mulf %117, %118 : vector<16x48xf32>
    %120 = tpu.concatenate %55, %119, %55 in 0 : vector<1x48xf32>, vector<16x48xf32>, vector<1x48xf32> -> vector<18x48xf32>
    %cst_58 = arith.constant 0.000000e+00 : f32
    %121 = vector.broadcast %cst_58 : f32 to vector<16x48xf32>
    %122 = vector.extract_strided_slice %120 {offsets = [0, 0], sizes = [16, 48], strides = [1, 1]} : vector<18x48xf32> to vector<16x48xf32>
    %c6 = arith.constant 6 : index
    %c0_59 = arith.constant 0 : index
    %c0_60 = arith.constant 0 : index
    %123 = vector.load %arg4[%c6, %c0_59, %c0_60] : memref<12x48x48xf32, #tpu.memory_space<vmem>>, vector<1x48x48xf32>
    %124 = vector.shape_cast %123 : vector<1x48x48xf32> to vector<48x48xf32>
    %cst_61 = arith.constant dense<0.000000e+00> : vector<16x48xf32>
    %125 = tpu.matmul %122, %124, %cst_61 {dimension_numbers = #tpu.dot_dimension_numbers<[1], [0], [0], [1], [0, 0, 1, 1], [], []>} : vector<16x48xf32>, vector<48x48xf32>, vector<16x48xf32> -> vector<16x48xf32>
    %126 = arith.addf %121, %125 : vector<16x48xf32>
    %127 = vector.extract_strided_slice %120 {offsets = [1, 0], sizes = [16, 48], strides = [1, 1]} : vector<18x48xf32> to vector<16x48xf32>
    %c7 = arith.constant 7 : index
    %c0_62 = arith.constant 0 : index
    %c0_63 = arith.constant 0 : index
    %128 = vector.load %arg4[%c7, %c0_62, %c0_63] : memref<12x48x48xf32, #tpu.memory_space<vmem>>, vector<1x48x48xf32>
    %129 = vector.shape_cast %128 : vector<1x48x48xf32> to vector<48x48xf32>
    %cst_64 = arith.constant dense<0.000000e+00> : vector<16x48xf32>
    %130 = tpu.matmul %127, %129, %cst_64 {dimension_numbers = #tpu.dot_dimension_numbers<[1], [0], [0], [1], [0, 0, 1, 1], [], []>} : vector<16x48xf32>, vector<48x48xf32>, vector<16x48xf32> -> vector<16x48xf32>
    %131 = arith.addf %126, %130 : vector<16x48xf32>
    %132 = vector.extract_strided_slice %120 {offsets = [2, 0], sizes = [16, 48], strides = [1, 1]} : vector<18x48xf32> to vector<16x48xf32>
    %c8 = arith.constant 8 : index
    %c0_65 = arith.constant 0 : index
    %c0_66 = arith.constant 0 : index
    %133 = vector.load %arg4[%c8, %c0_65, %c0_66] : memref<12x48x48xf32, #tpu.memory_space<vmem>>, vector<1x48x48xf32>
    %134 = vector.shape_cast %133 : vector<1x48x48xf32> to vector<48x48xf32>
    %cst_67 = arith.constant dense<0.000000e+00> : vector<16x48xf32>
    %135 = tpu.matmul %132, %134, %cst_67 {dimension_numbers = #tpu.dot_dimension_numbers<[1], [0], [0], [1], [0, 0, 1, 1], [], []>} : vector<16x48xf32>, vector<48x48xf32>, vector<16x48xf32> -> vector<16x48xf32>
    %136 = arith.addf %131, %135 : vector<16x48xf32>
    %c2_68 = arith.constant 2 : index
    %c0_69 = arith.constant 0 : index
    %c0_70 = arith.constant 0 : index
    %137 = vector.load %arg5[%c2_68, %c0_69, %c0_70] : memref<4x1x48xf32, #tpu.memory_space<vmem>>, vector<1x1x48xf32>
    %138 = vector.shape_cast %137 : vector<1x1x48xf32> to vector<1x48xf32>
    %139 = vector.broadcast %138 : vector<1x48xf32> to vector<16x48xf32>
    %140 = arith.addf %136, %139 : vector<16x48xf32>
    %cst_71 = arith.constant 0.000000e+00 : f32
    %141 = vector.broadcast %cst_71 : f32 to vector<16x48xf32>
    %142 = arith.cmpf oge, %140, %141 : vector<16x48xf32>
    %cst_72 = arith.constant 0.00999999977 : f32
    %143 = vector.broadcast %cst_72 : f32 to vector<16x48xf32>
    %144 = arith.mulf %143, %140 : vector<16x48xf32>
    %145 = arith.select %142, %140, %144 : vector<16x48xi1>, vector<16x48xf32>
    %146 = vector.broadcast %54 : vector<16x1xf32> to vector<16x48xf32>
    %147 = arith.mulf %145, %146 : vector<16x48xf32>
    %148 = tpu.concatenate %55, %147, %55 in 0 : vector<1x48xf32>, vector<16x48xf32>, vector<1x48xf32> -> vector<18x48xf32>
    %cst_73 = arith.constant 0.000000e+00 : f32
    %149 = vector.broadcast %cst_73 : f32 to vector<16x48xf32>
    %150 = vector.extract_strided_slice %148 {offsets = [0, 0], sizes = [16, 48], strides = [1, 1]} : vector<18x48xf32> to vector<16x48xf32>
    %c9 = arith.constant 9 : index
    %c0_74 = arith.constant 0 : index
    %c0_75 = arith.constant 0 : index
    %151 = vector.load %arg4[%c9, %c0_74, %c0_75] : memref<12x48x48xf32, #tpu.memory_space<vmem>>, vector<1x48x48xf32>
    %152 = vector.shape_cast %151 : vector<1x48x48xf32> to vector<48x48xf32>
    %cst_76 = arith.constant dense<0.000000e+00> : vector<16x48xf32>
    %153 = tpu.matmul %150, %152, %cst_76 {dimension_numbers = #tpu.dot_dimension_numbers<[1], [0], [0], [1], [0, 0, 1, 1], [], []>} : vector<16x48xf32>, vector<48x48xf32>, vector<16x48xf32> -> vector<16x48xf32>
    %154 = arith.addf %149, %153 : vector<16x48xf32>
    %155 = vector.extract_strided_slice %148 {offsets = [1, 0], sizes = [16, 48], strides = [1, 1]} : vector<18x48xf32> to vector<16x48xf32>
    %c10 = arith.constant 10 : index
    %c0_77 = arith.constant 0 : index
    %c0_78 = arith.constant 0 : index
    %156 = vector.load %arg4[%c10, %c0_77, %c0_78] : memref<12x48x48xf32, #tpu.memory_space<vmem>>, vector<1x48x48xf32>
    %157 = vector.shape_cast %156 : vector<1x48x48xf32> to vector<48x48xf32>
    %cst_79 = arith.constant dense<0.000000e+00> : vector<16x48xf32>
    %158 = tpu.matmul %155, %157, %cst_79 {dimension_numbers = #tpu.dot_dimension_numbers<[1], [0], [0], [1], [0, 0, 1, 1], [], []>} : vector<16x48xf32>, vector<48x48xf32>, vector<16x48xf32> -> vector<16x48xf32>
    %159 = arith.addf %154, %158 : vector<16x48xf32>
    %160 = vector.extract_strided_slice %148 {offsets = [2, 0], sizes = [16, 48], strides = [1, 1]} : vector<18x48xf32> to vector<16x48xf32>
    %c11 = arith.constant 11 : index
    %c0_80 = arith.constant 0 : index
    %c0_81 = arith.constant 0 : index
    %161 = vector.load %arg4[%c11, %c0_80, %c0_81] : memref<12x48x48xf32, #tpu.memory_space<vmem>>, vector<1x48x48xf32>
    %162 = vector.shape_cast %161 : vector<1x48x48xf32> to vector<48x48xf32>
    %cst_82 = arith.constant dense<0.000000e+00> : vector<16x48xf32>
    %163 = tpu.matmul %160, %162, %cst_82 {dimension_numbers = #tpu.dot_dimension_numbers<[1], [0], [0], [1], [0, 0, 1, 1], [], []>} : vector<16x48xf32>, vector<48x48xf32>, vector<16x48xf32> -> vector<16x48xf32>
    %164 = arith.addf %159, %163 : vector<16x48xf32>
    %c3_83 = arith.constant 3 : index
    %c0_84 = arith.constant 0 : index
    %c0_85 = arith.constant 0 : index
    %165 = vector.load %arg5[%c3_83, %c0_84, %c0_85] : memref<4x1x48xf32, #tpu.memory_space<vmem>>, vector<1x1x48xf32>
    %166 = vector.shape_cast %165 : vector<1x1x48xf32> to vector<1x48xf32>
    %167 = vector.broadcast %166 : vector<1x48xf32> to vector<16x48xf32>
    %168 = arith.addf %164, %167 : vector<16x48xf32>
    %169 = arith.addf %112, %168 : vector<16x48xf32>
    %cst_86 = arith.constant 0.000000e+00 : f32
    %170 = vector.broadcast %cst_86 : f32 to vector<16x80xf32>
    %171 = tpu.concatenate %169, %170 in 1 : vector<16x48xf32>, vector<16x80xf32> -> vector<16x128xf32>
    %c0_87 = arith.constant 0 : index
    %c0_88 = arith.constant 0 : index
    %c0_89 = arith.constant 0 : index
    %172 = vector.load %arg8[%c0_87, %c0_88, %c0_89] : memref<1x16x128xf32, #tpu.memory_space<vmem>>, vector<1x16x128xf32>
    %173 = vector.shape_cast %172 : vector<1x16x128xf32> to vector<16x128xf32>
    %174 = vector.shape_cast %171 : vector<16x128xf32> to vector<1x16x128xf32>
    tpu.vector_store %arg8[%c0_87, %c0_88, %c0_89], %174 {strides = array<i32>} : memref<1x16x128xf32, #tpu.memory_space<vmem>>, vector<1x16x128xf32>,
    return
  }
  func.func @transform_0(%arg0: i32) -> (i32, i32) {
    %c0_i32 = arith.constant 0 : i32
    %c0_i32_0 = arith.constant 0 : i32
    return %arg0, %c0_i32 : i32, i32
  }
  func.func @transform_1(%arg0: i32) -> (i32, i32, i32) {
    %c0_i32 = arith.constant 0 : i32
    %c0_i32_0 = arith.constant 0 : i32
    %c0_i32_1 = arith.constant 0 : i32
    %c0_i32_2 = arith.constant 0 : i32
    return %c0_i32, %c0_i32_0, %c0_i32_1 : i32, i32, i32
  }
  func.func @transform_2(%arg0: i32) -> (i32, i32) {
    %c0_i32 = arith.constant 0 : i32
    %c0_i32_0 = arith.constant 0 : i32
    %c0_i32_1 = arith.constant 0 : i32
    return %c0_i32, %c0_i32_0 : i32, i32
  }
  func.func @transform_3(%arg0: i32) -> (i32, i32, i32) {
    %c0_i32 = arith.constant 0 : i32
    %c0_i32_0 = arith.constant 0 : i32
    %c0_i32_1 = arith.constant 0 : i32
    %c0_i32_2 = arith.constant 0 : i32
    return %c0_i32, %c0_i32_0, %c0_i32_1 : i32, i32, i32
  }
  func.func @transform_4(%arg0: i32) -> (i32, i32, i32) {
    %c0_i32 = arith.constant 0 : i32
    %c0_i32_0 = arith.constant 0 : i32
    %c0_i32_1 = arith.constant 0 : i32
    %c0_i32_2 = arith.constant 0 : i32
    return %c0_i32, %c0_i32_0, %c0_i32_1 : i32, i32, i32
  }
  func.func @transform_5(%arg0: i32) -> (i32, i32) {
    %c0_i32 = arith.constant 0 : i32
    %c0_i32_0 = arith.constant 0 : i32
    %c0_i32_1 = arith.constant 0 : i32
    return %c0_i32, %c0_i32_0 : i32, i32
  }
  func.func @transform_6(%arg0: i32) -> (i32, i32) {
    %c0_i32 = arith.constant 0 : i32
    %c0_i32_0 = arith.constant 0 : i32
    %c0_i32_1 = arith.constant 0 : i32
    return %c0_i32, %c0_i32_0 : i32, i32
  }
  func.func @transform_7(%arg0: i32) -> (i32, i32, i32) {
    %c0_i32 = arith.constant 0 : i32
    %c0_i32_0 = arith.constant 0 : i32
    %c0_i32_1 = arith.constant 0 : i32
    return %arg0, %c0_i32, %c0_i32_0 : i32, i32, i32
  }
}

</mosaic_0001>

<bundles_post_ra>
// kernel: conv_block_forward.1
= control target key start
LH: loop header
LB: loop body
LE: loop exit
PB: predicated region body
PF: predicated region fallthrough
CT: control target
= control target key end

     0   :  { %12 = vsyncpa [#allocation3], 0  ;;  %s2695_s24 = smov [#allocation2]   ;;  %s3181_s0 = inlined_call_operand.vmem [shape: f32[32,64], index: 0, kind: input, shape index: {}]   ;;  %s3182_s1 = inlined_call_operand.hbm [shape: f32[3,64,112], index: 1, kind: input, shape index: {}]   ;;  %s3183_s2 = inlined_call_operand.vmem [shape: f32[1,112], index: 2, kind: input, shape index: {}]   ;;  %s3184_s3 = inlined_call_operand.vmem [shape: f32[12,48,48], index: 3, kind: input, shape index: {}]   ;;  %s3185_s4 = inlined_call_operand.vmem [shape: f32[4,1,48], index: 4, kind: input, shape index: {}]   ;;  %s3186_s5 = inlined_call_operand.vmem [shape: f32[16,28], index: 5, kind: input, shape index: {}]   ;;  %s3187_s6 = inlined_call_operand.vmem [shape: f32[96,48], index: 6, kind: input, shape index: {}]   ;;  %s3188_s7 = inlined_call_operand.vmem [shape: f32[1,16,128], index: 7, kind: output, shape index: {}]  }
   0x1   :  { %s20_s25 = sshll.u32 %s2695_s24, 4  ;;  %s2671_s28 = scalar_lea.hbm %s3182_s1, 3072  ;;  %s21_s25 = int_to_ptr.vmem [resolvable:$true] %s20_s25 }
   0x2   :  { %p2672_p0 = scmp.ne.s32.totalorder %s3182_s1, %s2671_s28  ;;  %p2675_p1 = scmp.lt.u32.totalorder %s2671_s28, %s3182_s1 }
   0x4   :  { %p2677_p2 = pnand %p2675_p1, %p2672_p0 }
   0x6   :  { %2680 = shalt.err (!%p2677_p2)
}
   0x7   :  { %s2681_s10 = scalar_lea.vmem %s21_s25, 3072  ;;  %p2686_p4 = scmp.lt.s32.totalorder %s21_s25, %s21_s25 }
   0x8   :  { %p2682_p3 = scmp.ne.s32.totalorder %s21_s25, %s2681_s10  ;;  %p2687_p5 = scmp.lt.s32.totalorder %s2681_s10, %s2681_s10 }
   0xa   :  { %p2688_p6 = por %p2687_p5, %p2686_p4 }
   0xc   :  { %p2689_p7 = pnand %p2688_p6, %p2682_p3 }
   0xe   :  { %2692 = shalt.err (!%p2689_p7)
}
   0xf   :  { %s2696_s11 = smov 128   ;;  %s2697_s12 = smov 8  }
  0x10   :  { %26 = dma.hbm_to_vmem [thread:$0]  %s3182_s1, 3072, %s21_s25, [#allocation3], %s2696_s11, %s2696_s11, %s2697_s12  }
  0x11   :  { %2693 = dma.done.wait [#allocation3], 3072  }
  0x12   :  { %2694 = vsyncadd [#allocation3], 4294964224  ;;  %v53_v0 = vld [vmem:[#allocation2 + $0x40] sm:$0xff]  ;;  %v54_v1 = vld [vmem:[#allocation2 + $0x48] sm:$0xff]  ;;  %vm65_vm0 = vcmask 1046528   ;;  %vm73_vm1 = vcmask 523264  }
  0x13   :  { %v55_v2 = vld [vmem:[#allocation2 + $0x50] sm:$0xff]  ;;  %v2414_v3 = vpack.c.bf16 %v54_v1, %v53_v0  ;;  %v56_v4 = vld [vmem:[#allocation2 + $0x58] sm:$0xff]  ;;  %v57_v6 = vld [vmem:[#allocation2 + $0x60] sm:$0xff]  ;;  %vm269_vm2 = vcmask 1045504   ;;  %vm421_vm3 = vcmask 228352   ;;  %vm428_vm4 = vcmask 1043456  }
  0x14   :  { %v2418_v5 = vpack.c.bf16 %v56_v4, %v55_v2  ;;  %v58_v7 = vld [vmem:[#allocation2 + $0x68] sm:$0xff]  ;;  %v2757_v8 = vld [vmem:[%s3181_s0] sm:$0xff]  ;;  %v59_v13 = vld [vmem:[#allocation2 + $0x70] sm:$0xff]  ;;  %vm2698_vm5 = vmmov 1   ;;  %s2699_s24 = smov 112   ;;  %vm537_vm7 = vcmask 785408  }
  0x15   :  { %2415 = vmatprep.subr.bf16.mxu0 %v2414_v3  ;;  %v2762_v9 = vld [vmem:[%s3181_s0 + $0x8] sm:$0xff]  ;;  %v66_v10 = vrot.slane %v2757_v8, 1  ;;  %v2422_v12 = vpack.c.bf16 %v58_v7, %v57_v6  ;;  %v60_v14 = vld [vmem:[#allocation2 + $0x78] sm:$0xff]  ;;  %v2771_v17 = vld [vmem:[%s3181_s0 + $0x10] sm:$0xff]  ;;  %v270_v41 = vrot.slane %v2757_v8, 2  ;;  %vm662_vm12 = vcmask 1040384  }
  0x16   :  { %2417 = vmatpush3.bf16.msra.mxu0 %v2414_v3  ;;  %v67_v11 = vrot.slane %v2762_v9, 1  ;;  %v2426_v16 = vpack.c.bf16 %v60_v14, %v59_v13  ;;  %v44_v18 = vld [vmem:[#allocation2] sm:$0xff]  ;;  %v45_v19 = vld [vmem:[#allocation2 + $0x8] sm:$0xff]  ;;  %v2776_v20 = vld [vmem:[%s3181_s0 + $0x18] sm:$0xff]  ;;  %v69_v21 = vrot.slane %v2771_v17, 1  ;;  %v271_v42 = vrot.slane %v2762_v9, 2 }
  0x17   :  { %2419 = vmatprep.subr.bf16.mxu0 %v2418_v5  ;;  %v2430_v22 = vpack.c.bf16 %v45_v19, %v44_v18  ;;  %v71_v23 = vrot.slane %v2776_v20, 1  ;;  %v46_v24 = vld [vmem:[#allocation2 + $0x10] sm:$0xff]  ;;  %v47_v25 = vld [vmem:[#allocation2 + $0x18] sm:$0xff]  ;;  %v48_v29 = vld [vmem:[#allocation2 + $0x20] sm:$0xff]  ;;  %v273_v50 = vrot.slane %v2771_v17, 2  ;;  %v275_v51 = vrot.slane %v2776_v20, 2 }
  0x18   :  { %v68_v15 = vsel %vm65_vm0, %v66_v10, %v67_v11  ;;  %v70_v26 = vsel %vm65_vm0, %v67_v11, %v69_v21  ;;  %v2434_v27 = vpack.c.bf16 %v47_v25, %v46_v24  ;;  %v49_v30 = vld [vmem:[#allocation2 + $0x28] sm:$0xff]  ;;  %v50_v32 = vld [vmem:[#allocation2 + $0x30] sm:$0xff]  ;;  %v51_v33 = vld [vmem:[#allocation2 + $0x38] sm:$0xff]  ;;  %v272_v46 = vsel %vm269_vm2, %v270_v41, %v271_v42 }
  0x19   :  { %2146 = vmatprep.mubr.msk.f32.mxu0 %vm73_vm1, %v68_v15  ;;  %v72_v28 = vsel %vm65_vm0, %v69_v21, %v71_v23  ;;  %v2438_v31 = vpack.c.bf16 %v49_v30, %v48_v29  ;;  %v2442_v34 = vpack.c.bf16 %v51_v33, %v50_v32  ;;  %v261_v35 = vld [vmem:[#allocation2 + $0x80] sm:$0xff]  ;;  %v262_v36 = vld [vmem:[#allocation2 + $0x88] sm:$0xff]  ;;  %v263_v38 = vld [vmem:[#allocation2 + $0x90] sm:$0xff]  ;;  %v274_v52 = vsel %vm269_vm2, %v271_v42, %v273_v50 }
  0x1a   :  { %2421 = vmatpush3.bf16.msra.mxu0 %v2418_v5  ;;  %v2446_v37 = vpack.c.bf16 %v262_v36, %v261_v35  ;;  %v264_v39 = vld [vmem:[#allocation2 + $0x98] sm:$0xff]  ;;  %v265_v43 = vld [vmem:[#allocation2 + $0xa0] sm:$0xff]  ;;  %v266_v44 = vld [vmem:[#allocation2 + $0xa8] sm:$0xff]  ;;  %v276_v53 = vsel %vm269_vm2, %v273_v50, %v275_v51  ;;  %vm690_vm13 = vcmask 392192  }
  0x1b   :  { %2423 = vmatprep.subr.bf16.mxu0 %v2422_v12  ;;  %v2450_v40 = vpack.c.bf16 %v264_v39, %v263_v38  ;;  %v2454_v45 = vpack.c.bf16 %v266_v44, %v265_v43  ;;  %v267_v47 = vld [vmem:[#allocation2 + $0xb0] sm:$0xff]  ;;  %v268_v48 = vld [vmem:[#allocation2 + $0xb8] sm:$0xff]  ;;  %v419_v54 = vld [vmem:[%s3186_s5] sm:$0xff] }
  0x1c   :  { %v2458_v49 = vpack.c.bf16 %v268_v48, %v267_v47  ;;  %2204 = vmatprep.mubr.msk.f32.mxu1 %vm421_vm3, %v419_v54  ;;  %v1873_v55 = vld [vmem:[%s3183_s2] ss:$0 sm:$0xff]  ;;  %vm2467_vm6 = vmpackc.low %vm428_vm4, %vm2698_vm5  ;;  %v420_v24 = vld [vmem:[%s3186_s5 + $0x8] sm:$0xff]  ;;  %s2700_s2 = smov 120  }
  0x1d   :  { %v525_v25 = vld [vmem:[%s3187_s6] sm:$0xff]  ;;  %v528_v29 = vld [vmem:[%s3187_s6 + $0x18] sm:$0xff]  ;;  %v530_v32 = vld [vmem:[%s3187_s6 + $0x28] sm:$0xff] }
  0x1e   :  { %2425 = vmatpush3.bf16.msra.mxu0 %v2422_v12  ;;  %v532_v35 = vld [vmem:[%s3187_s6 + $0x38] sm:$0xff]  ;;  %v534_v38 = vld [vmem:[%s3187_s6 + $0x48] sm:$0xff] }
  0x1f   :  { %2427 = vmatprep.subr.bf16.mxu0 %v2426_v16  ;;  %v536_v41 = vld [vmem:[%s3187_s6 + $0x58] sm:$0xff] }
  0x20   :  { %v1882_v54 = vld [vmem:[%s3184_s3 + $0x38] sm:$0xff] }
  0x22   :  { %2429 = vmatpush3.bf16.msra.mxu0 %v2426_v16 }
  0x23   :  { %2431 = vmatprep.subr.bf16.mxu0 %v2430_v22 }
  0x25   :  { %2147 = vmatmul.mubr.msk.f32.vlgmr.msra.gmra.mrb[0].mxu0 %vm73_vm1, %v70_v26  ;;  %v526_v26 = vld [vmem:[%s3187_s6 + $0x8] sm:$0xff] }
  0x26   :  { %2433 = vmatpush3.bf16.msra.mxu0 %v2430_v22  ;;  %2149 = vmatprep.mubr.msk.f32.mxu0 %vm73_vm1, %v72_v28  ;;  %v2472_v28 = vpack.c.bf16 %v526_v26, %v525_v25 }
  0x27   :  { %2435 = vmatprep.subr.bf16.mxu0 %v2434_v27 }
  0x29   :  { %2150 = vmatmul.mubr.msk.f32.gmra.mrb[2].mxu0 %vm73_vm1, %v71_v23 }
  0x2a   :  { %2437 = vmatpush3.bf16.msra.mxu0 %v2434_v27  ;;  %2168 = vmatprep.mubr.msk.f32.mxu0 %vm73_vm1, %v2757_v8  ;;  %v527_v27 = vld [vmem:[%s3187_s6 + $0x10] sm:$0xff] }
  0x2b   :  { %2439 = vmatprep.subr.bf16.mxu0 %v2438_v31  ;;  %v2476_v30 = vpack.c.bf16 %v528_v29, %v527_v27 }
  0x2e   :  { %2441 = vmatpush3.bf16.msra.mxu0 %v2438_v31  ;;  %v529_v31 = vld [vmem:[%s3187_s6 + $0x20] sm:$0xff] }
  0x2f   :  { %2443 = vmatprep.subr.bf16.mxu0 %v2442_v34  ;;  %v2480_v33 = vpack.c.bf16 %v530_v32, %v529_v31 }
  0x32   :  { %2445 = vmatpush3.bf16.msra.mxu0 %v2442_v34  ;;  %v531_v34 = vld [vmem:[%s3187_s6 + $0x30] sm:$0xff] }
  0x33   :  { %2447 = vmatprep.subr.bf16.mxu0 %v2446_v37  ;;  %v2484_v36 = vpack.c.bf16 %v532_v35, %v531_v34  ;;  %v674_v35 = vld [vmem:[%s3184_s3 + $0x20] sm:$0xff] }
  0x35   :  { %2169 = vmatmul.mubr.msk.f32.vlgmr.msra.gmra.mrb[0].mxu0 %vm73_vm1, %v2762_v9 }
  0x36   :  { %2449 = vmatpush3.bf16.msra.mxu0 %v2446_v37  ;;  %2171 = vmatprep.mubr.msk.f32.mxu0 %vm73_vm1, %v2771_v17  ;;  %v533_v37 = vld [vmem:[%s3187_s6 + $0x40] sm:$0xff] }
  0x37   :  { %2451 = vmatprep.subr.bf16.mxu0 %v2450_v40  ;;  %v2488_v39 = vpack.c.bf16 %v534_v38, %v533_v37  ;;  %v1891_v38 = vld [vmem:[%s3184_s3 + $0x60] sm:$0xff] }
  0x39   :  { %2172 = vmatmul.mubr.msk.f32.gmra.mrb[2].mxu0 %vm73_vm1, %v2776_v20 }
  0x3a   :  { %2453 = vmatpush3.bf16.msra.mxu0 %v2450_v40  ;;  %2190 = vmatprep.mubr.msk.f32.mxu0 %vm73_vm1, %v272_v46  ;;  %v535_v40 = vld [vmem:[%s3187_s6 + $0x50] sm:$0xff] }
  0x3b   :  { %2455 = vmatprep.subr.bf16.mxu0 %v2454_v45  ;;  %v2492_v42 = vpack.c.bf16 %v536_v41, %v535_v40  ;;  %v1893_v41 = vld [vmem:[%s3184_s3 + $0x70] sm:$0xff] }
  0x3e   :  { %2457 = vmatpush3.bf16.msra.mxu0 %v2454_v45 }
  0x3f   :  { %2459 = vmatprep.subr.bf16.mxu0 %v2458_v49 }
  0x42   :  { %2461 = vmatpush3.bf16.msra.mxu0 %v2458_v49 }
  0x45   :  { %2191 = vmatmul.mubr.msk.f32.vlgmr.msra.gmra.mrb[0].mxu0 %vm73_vm1, %v274_v52 }
  0x46   :  { %2193 = vmatprep.mubr.msk.f32.mxu0 %vm73_vm1, %v276_v53  ;;  %v1881_v53 = vld [vmem:[%s3184_s3 + $0x30] sm:$0xff] }
  0x49   :  { %2194 = vmatmul.mubr.msk.f32.gmra.mrb[2].mxu0 %vm73_vm1, %v275_v51 }
 0x118   :  { %v2192_v56 = vpop.f32.mrb[0].mxu0 }
 0x119   :  { %v382_v57 = vadd.f32 %v2192_v56, %v1873_v55  ;;  %v351_v58 = vpop.f32.mrb[1].mxu0  ;;  %v1883_v56 = vld [vmem:[%s3184_s3 + $0x40] sm:$0xff] }
 0x11a   :  { %v381_v59 = vadd.f32 %v1873_v55, %v351_v58 }
 0x11b   :  { %v390_v60 = vrot.slane %v382_v57, 1  ;;  %v405_v61 = vrot.slane %v382_v57, 2 }
 0x11c   :  { %v389_v62 = vrot.slane %v381_v59, 1  ;;  %v404_v63 = vrot.slane %v381_v59, 2  ;;  %v2195_v0 = vpop.f32.mrb[2].mxu0 }
 0x11d   :  { %v384_v1 = vadd.f32 %v2195_v0, %v1873_v55  ;;  %v361_v2 = vpop.f32.mrb[3].mxu0 }
 0x11e   :  { %v391_v3 = vsel %vm65_vm0, %v389_v62, %v390_v60  ;;  %v383_v4 = vadd.f32 %v1873_v55, %v361_v2  ;;  %v406_v5 = vsel %vm269_vm2, %v404_v63, %v405_v61  ;;  %v2496_v55 = vpack.c.bf16 %v1882_v54, %v1881_v53  ;;  %v670_v62 = vld [vmem:[%s3184_s3] sm:$0xff]  ;;  %v671_v63 = vld [vmem:[%s3184_s3 + $0x8] sm:$0xff] }
 0x11f   :  { %v400_v6 = vmax.f32 %v381_v59, %v391_v3  ;;  %v394_v7 = vrot.slane %v384_v1, 1  ;;  %v409_v8 = vrot.slane %v384_v1, 2  ;;  %v1885_v59 = vld [vmem:[%s3184_s3 + $0x50] sm:$0xff]  ;;  %v2508_v0 = vpack.c.bf16 %v671_v63, %v670_v62  ;;  %v1903_v54 = vld [vmem:[%s3184_s3 + $0xa8] sm:$0xff]  ;;  %v1910_v62 = vld [vmem:[%s3184_s3 + $0xe0] sm:$0xff] }
 0x120   :  { %v392_v9 = vrot.slane %v383_v4, 1  ;;  %v407_v10 = vrot.slane %v383_v4, 2  ;;  %v1911_v63 = vld [vmem:[%s3184_s3 + $0xe8] sm:$0xff] }
 0x121   :  { %v403_v11 = vmax.f32 %v384_v1, %v394_v7  ;;  %v415_v12 = vmax.f32 %v400_v6, %v406_v5  ;;  %v619_v1 = vlaneseq }
 0x122   :  { %v395_v13 = vsel %vm65_vm0, %v392_v9, %v394_v7  ;;  %v410_v14 = vsel %vm269_vm2, %v407_v10, %v409_v8  ;;  %v393_v15 = vsel %vm65_vm0, %v390_v60, %v392_v9  ;;  %v408_v16 = vsel %vm269_vm2, %v405_v61, %v407_v10  ;;  %v1886_v60 = vld [vmem:[%s3184_s3 + $0x58] sm:$0xff] }
 0x123   :  { %v402_v17 = vmax.f32 %v383_v4, %v395_v13  ;;  %v401_v18 = vmax.f32 %v382_v57, %v393_v15  ;;  %v418_v19 = vmax.f32 %v403_v11, %v409_v8  ;;  %v1884_v57 = vld [vmem:[%s3184_s3 + $0x48] sm:$0xff]  ;;  %v2504_v61 = vpack.c.bf16 %v1886_v60, %v1885_v59  ;;  %v1905_v60 = vld [vmem:[%s3184_s3 + $0xb8] sm:$0xff] }
 0x124   :  { %v2500_v58 = vpack.c.bf16 %v1884_v57, %v1883_v56  ;;  %v620_v2 = vshrl.u32 %v619_v1, 7  ;;  %v2701_v7 = vmov 0.0   ;;  %v1908_v56 = vld [vmem:[%s3184_s3 + $0xd0] sm:$0xff]  ;;  %v1909_v57 = vld [vmem:[%s3184_s3 + $0xd8] sm:$0xff]  ;;  %v2540_v1 = vpack.c.bf16 %v1911_v63, %v1910_v62 }
 0x125   :  { %v417_v20 = vmax.f32 %v402_v17, %v410_v14  ;;  %v416_v21 = vmax.f32 %v401_v18, %v408_v16  ;;  %v2536_v59 = vpack.c.bf16 %v1909_v57, %v1908_v56 }
 0x126   :  { %v621_v3 = vadd.s32 8, %v620_v2  ;;  %v626_v5 = vand.u32 7, %v620_v2  ;;  %v1917_v2 = vld [vmem:[%s3184_s3 + $0xf8] sm:$0xff] }
 0x127   :  { %v2462_v22 = vpack.c.bf16 %v416_v21, %v415_v12  ;;  %v2466_v23 = vpack.c.bf16 %v418_v19, %v417_v20  ;;  %v672_v20 = vld [vmem:[%s3184_s3 + $0x10] sm:$0xff]  ;;  %v673_v21 = vld [vmem:[%s3184_s3 + $0x18] sm:$0xff] }
 0x128   :  { %v633_v4 = vand.u32 7, %v621_v3  ;;  %vm646_vm9 = vcmp.lt.s32.totalorder %v626_v5, 6 }
 0x129   :  { %2463 = vmatprep.subr.bf16.mxu1 %v2462_v22  ;;  %v2889_v11 = vsel %vm646_vm9, 1.0, %v2701_v7 }
 0x12a   :  { %2465 = vmatpush3.bf16.msra.mxu1 %v2462_v22  ;;  %vm647_vm8 = vcmp.lt.s32.totalorder %v633_v4, 6  ;;  %v1899_v4 = vld [vmem:[%s3185_s4] ss:$0 sm:$0xff] }
 0x12b   :  { %2468 = vmatprep.subr.msk.bf16.mxu1 %vm2467_vm6, %v2466_v23  ;;  %v2883_v8 = vsel %vm647_vm8, 1.0, %v2701_v7 }
 0x12e   :  { %2471 = vmatpush3.bf16.msk.msra.mxu1 %vm2467_vm6, %v2466_v23 }
 0x12f   :  { %2473 = vmatprep.subr.bf16.mxu1 %v2472_v28 }
 0x131   :  { %2205 = vmatmul.mubr.msk.f32.vlgmr.msra.gmra.mrb[0].mxu1 %vm421_vm3, %v420_v24 }
 0x132   :  { %2475 = vmatpush3.bf16.msra.mxu1 %v2472_v28 }
 0x133   :  { %2477 = vmatprep.subr.bf16.mxu1 %v2476_v30 }
 0x136   :  { %2479 = vmatpush3.bf16.msra.mxu1 %v2476_v30  ;;  %v2512_v30 = vpack.c.bf16 %v673_v21, %v672_v20  ;;  %v1919_v20 = vld [vmem:[%s3184_s3 + $0x108] sm:$0xff] }
 0x137   :  { %2481 = vmatprep.subr.bf16.mxu1 %v2480_v33 }
 0x13a   :  { %2483 = vmatpush3.bf16.msra.mxu1 %v2480_v33 }
 0x13b   :  { %2485 = vmatprep.subr.bf16.mxu1 %v2484_v36 }
 0x13e   :  { %2487 = vmatpush3.bf16.msra.mxu1 %v2484_v36  ;;  %v675_v36 = vld [vmem:[%s3184_s3 + $0x28] sm:$0xff] }
 0x13f   :  { %2489 = vmatprep.subr.bf16.mxu1 %v2488_v39  ;;  %v2516_v37 = vpack.c.bf16 %v675_v36, %v674_v35 }
 0x142   :  { %2491 = vmatpush3.bf16.msra.mxu1 %v2488_v39  ;;  %v1892_v39 = vld [vmem:[%s3184_s3 + $0x68] sm:$0xff] }
 0x143   :  { %2493 = vmatprep.subr.bf16.mxu1 %v2492_v42  ;;  %v2520_v40 = vpack.c.bf16 %v1892_v39, %v1891_v38 }
 0x146   :  { %2495 = vmatpush3.bf16.msra.mxu1 %v2492_v42  ;;  %v1894_v42 = vld [vmem:[%s3184_s3 + $0x78] sm:$0xff] }
 0x147   :  { %2497 = vmatprep.subr.bf16.mxu1 %v2496_v55 }
 0x204   :  { %v2206_v43 = vpop.f32.mrb[0].mxu1 }
 0x205   :  { %v498_v44 = vpop.f32.mrb[1].mxu1 }
 0x206   :  { %517 = vrot.lane.b32.xlu1 %v498_v44, %s2699_s24  ;;  %509 = vrot.lane.b32.xlu0 %v498_v44, %s2700_s2 }
 0x20a   :  { %519 = vrot.lane.b32.xlu1 %v2206_v43, %s2699_s24  ;;  %511 = vrot.lane.b32.xlu0 %v2206_v43, %s2700_s2 }
 0x278   :  { %v518_v45 = vpop.permute.xlu1 %517  ;;  %v510_v46 = vpop.permute.xlu0 %509 }
 0x279   :  { %v515_v47 = vmax.f32 %v498_v44, %v510_v46  ;;  %v1895_v44 = vld [vmem:[%s3184_s3 + $0x80] sm:$0xff] }
 0x27b   :  { %v523_v48 = vmax.f32 %v515_v47, %v518_v45  ;;  %v1896_v45 = vld [vmem:[%s3184_s3 + $0x88] sm:$0xff]  ;;  %v1900_v47 = vld [vmem:[%s3184_s3 + $0x90] sm:$0xff] }
 0x27c   :  { %v512_v49 = vpop.permute.xlu0 %511  ;;  %v520_v51 = vpop.permute.xlu1 %519  ;;  %v2528_v46 = vpack.c.bf16 %v1896_v45, %v1895_v44  ;;  %v1935_v44 = vld [vmem:[%s3184_s3 + $0x168] sm:$0xff] }
 0x27d   :  { %v516_v50 = vmax.f32 %v2206_v43, %v512_v49  ;;  %2231 = vmatprep.mubr.msk.f32.mxu1 %vm537_vm7, %v523_v48  ;;  %v2524_v43 = vpack.c.bf16 %v1894_v42, %v1893_v41  ;;  %v1901_v48 = vld [vmem:[%s3184_s3 + $0x98] sm:$0xff] }
 0x27e   :  { %v2544_v49 = vpack.c.bf16 %v1901_v48, %v1900_v47  ;;  %v1933_v41 = vld [vmem:[%s3184_s3 + $0x158] sm:$0xff] }
 0x27f   :  { %v524_v52 = vmax.f32 %v516_v50, %v520_v51  ;;  %v1906_v50 = vld [vmem:[%s3184_s3 + $0xc0] sm:$0xff]  ;;  %v1907_v51 = vld [vmem:[%s3184_s3 + $0xc8] sm:$0xff]  ;;  %v1937_v47 = vld [vmem:[%s3184_s3 + $0x178] sm:$0xff] }
 0x280   :  { %2545 = vmatprep.subr.bf16.mxu0 %v2544_v49  ;;  %v2532_v53 = vpack.c.bf16 %v1907_v51, %v1906_v50  ;;  %v1927_v50 = vld [vmem:[%s3184_s3 + $0x128] sm:$0xff] }
 0x281   :  { %2232 = vmatmul.mubr.msk.f32.vlgmr.msra.gmra.mrb[2].mxu1 %vm537_vm7, %v524_v52  ;;  %2547 = vmatpush3.bf16.msra.mxu0 %v2544_v49  ;;  %v1902_v52 = vld [vmem:[%s3184_s3 + $0xa0] sm:$0xff] }
 0x282   :  { %2499 = vmatpush3.bf16.msra.mxu1 %v2496_v55  ;;  %v2548_v55 = vpack.c.bf16 %v1903_v54, %v1902_v52  ;;  %v1926_v49 = vld [vmem:[%s3184_s3 + $0x120] sm:$0xff] }
 0x283   :  { %2501 = vmatprep.subr.bf16.mxu1 %v2500_v58  ;;  %v2580_v51 = vpack.c.bf16 %v1927_v50, %v1926_v49  ;;  %v1951_v49 = vld [vmem:[%s3185_s4 + $0x2] ss:$0 sm:$0xff] }
 0x284   :  { %2549 = vmatprep.subr.bf16.mxu0 %v2548_v55 }
 0x285   :  { %2551 = vmatpush3.bf16.msra.mxu0 %v2548_v55  ;;  %v1925_v55 = vld [vmem:[%s3185_s4 + $0x1] ss:$0 sm:$0xff] }
 0x286   :  { %2503 = vmatpush3.bf16.msra.mxu1 %v2500_v58  ;;  %v1904_v58 = vld [vmem:[%s3184_s3 + $0xb0] sm:$0xff] }
 0x287   :  { %2505 = vmatprep.subr.bf16.mxu1 %v2504_v61 }
 0x28a   :  { %2507 = vmatpush3.bf16.msra.mxu1 %v2504_v61  ;;  %v2552_v61 = vpack.c.bf16 %v1905_v60, %v1904_v58 }
 0x28b   :  { %2509 = vmatprep.subr.bf16.mxu1 %v2508_v0 }
 0x28c   :  { %2553 = vmatprep.subr.bf16.mxu0 %v2552_v61 }
 0x28d   :  { %2555 = vmatpush3.bf16.msra.mxu0 %v2552_v61 }
 0x354   :  { %v2881_v6 = vpop.f32.mrb[2].mxu1 }
 0x355   :  { %vm653_vm10 = vcmp.ge.f32.partialorder %v2881_v6, 0.0  ;;  %v655_v9 = vmul.f32 0.01, %v2881_v6  ;;  %v2887_v10 = vpop.f32.mrb[3].mxu1 }
 0x356   :  { %vm652_vm11 = vcmp.ge.f32.partialorder %v2887_v10, 0.0  ;;  %v654_v12 = vmul.f32 0.01, %v2887_v10 }
 0x357   :  { %v657_v13 = vsel %vm653_vm10, %v2881_v6, %v655_v9 }
 0x358   :  { %v659_v14 = vmul.f32 %v2883_v8, %v657_v13  ;;  %v656_v15 = vsel %vm652_vm11, %v2887_v10, %v654_v12 }
 0x359   :  { %v658_v16 = vmul.f32 %v2889_v11, %v656_v15 }
 0x35a   :  { %v664_v17 = vrot.slane %v659_v14, 7 }
 0x35b   :  { %v663_v18 = vrot.slane %v658_v16, 7 }
 0x35c   :  { %v669_v19 = vsel %vm662_vm12, %v664_v17, 0.0 }
 0x35d   :  { %v668_v22 = vsel %vm662_vm12, 0.0, %v663_v18  ;;  %v665_v23 = vsel %vm662_vm12, %v663_v18, %v664_v17  ;;  %v688_v24 = vrot.slane %v669_v19, 1  ;;  %v859_v25 = vrot.slane %v669_v19, 2  ;;  %v1918_v19 = vld [vmem:[%s3184_s3 + $0x100] sm:$0xff] }
 0x35e   :  { %v685_v26 = vrot.slane %v668_v22, 1  ;;  %v686_v27 = vrot.slane %v665_v23, 1  ;;  %v856_v28 = vrot.slane %v668_v22, 2  ;;  %v857_v29 = vrot.slane %v665_v23, 2 }
 0x360   :  { %v687_v31 = vsel %vm65_vm0, %v685_v26, %v686_v27  ;;  %v689_v32 = vsel %vm65_vm0, %v686_v27, %v688_v24  ;;  %v858_v33 = vsel %vm269_vm2, %v856_v28, %v857_v29  ;;  %v860_v34 = vsel %vm269_vm2, %v857_v29, %v859_v25 }
 0x361   :  { %2246 = vmatprep.mubr.msk.f32.mxu1 %vm690_vm13, %v687_v31  ;;  %v2560_v24 = vpack.c.bf16 %v1919_v20, %v1918_v19  ;;  %v1930_v20 = vld [vmem:[%s3184_s3 + $0x140] sm:$0xff] }
 0x362   :  { %2247 = vmatmul.mubr.msk.f32.vlgmr.msra.gmra.mrb[4].mxu1 %vm690_vm13, %v689_v32 }
 0x363   :  { %2511 = vmatpush3.bf16.msra.mxu1 %v2508_v0  ;;  %2261 = vmatprep.mubr.msk.f32.mxu1 %vm690_vm13, %v668_v22  ;;  %v1916_v0 = vld [vmem:[%s3184_s3 + $0xf0] sm:$0xff] }
 0x364   :  { %2513 = vmatprep.subr.bf16.mxu1 %v2512_v30  ;;  %v2556_v3 = vpack.c.bf16 %v1917_v2, %v1916_v0 }
 0x366   :  { %2557 = vmatprep.subr.bf16.mxu0 %v2556_v3 }
 0x367   :  { %2515 = vmatpush3.bf16.msra.mxu1 %v2512_v30 }
 0x368   :  { %2517 = vmatprep.subr.bf16.mxu1 %v2516_v37 }
 0x36b   :  { %2519 = vmatpush3.bf16.msra.mxu1 %v2516_v37 }
 0x36c   :  { %2521 = vmatprep.subr.bf16.mxu1 %v2520_v40 }
 0x36e   :  { %2262 = vmatmul.mubr.msk.f32.vlgmr.msra.gmra.mrb[4].mxu1 %vm690_vm13, %v665_v23 }
 0x36f   :  { %2523 = vmatpush3.bf16.msra.mxu1 %v2520_v40  ;;  %2276 = vmatprep.mubr.msk.f32.mxu1 %vm690_vm13, %v858_v33  ;;  %v1920_v33 = vld [vmem:[%s3184_s3 + $0x110] sm:$0xff] }
 0x370   :  { %2525 = vmatprep.subr.bf16.mxu1 %v2524_v43  ;;  %v1932_v40 = vld [vmem:[%s3184_s3 + $0x150] sm:$0xff] }
 0x371   :  { %v2568_v42 = vpack.c.bf16 %v1933_v41, %v1932_v40  ;;  %v1960_v40 = vld [vmem:[%s3184_s3 + $0x1f0] sm:$0xff]  ;;  %v1961_v41 = vld [vmem:[%s3184_s3 + $0x1f8] sm:$0xff] }
 0x373   :  { %2527 = vmatpush3.bf16.msra.mxu1 %v2524_v43  ;;  %v1934_v43 = vld [vmem:[%s3184_s3 + $0x160] sm:$0xff] }
 0x374   :  { %2529 = vmatprep.subr.bf16.mxu1 %v2528_v46  ;;  %v2572_v45 = vpack.c.bf16 %v1935_v44, %v1934_v43  ;;  %v1962_v43 = vld [vmem:[%s3184_s3 + $0x200] sm:$0xff]  ;;  %v1963_v44 = vld [vmem:[%s3184_s3 + $0x208] sm:$0xff] }
 0x377   :  { %2531 = vmatpush3.bf16.msra.mxu1 %v2528_v46  ;;  %v1936_v46 = vld [vmem:[%s3184_s3 + $0x170] sm:$0xff] }
 0x378   :  { %2533 = vmatprep.subr.bf16.mxu1 %v2532_v53  ;;  %v2576_v48 = vpack.c.bf16 %v1937_v47, %v1936_v46  ;;  %v1952_v46 = vld [vmem:[%s3184_s3 + $0x1b0] sm:$0xff]  ;;  %v1953_v47 = vld [vmem:[%s3184_s3 + $0x1b8] sm:$0xff] }
 0x37a   :  { %2277 = vmatmul.mubr.msk.f32.vlgmr.msra.gmra.mrb[4].mxu1 %vm690_vm13, %v860_v34  ;;  %v1921_v34 = vld [vmem:[%s3184_s3 + $0x118] sm:$0xff] }
 0x37b   :  { %2535 = vmatpush3.bf16.msra.mxu1 %v2532_v53  ;;  %v2564_v39 = vpack.c.bf16 %v1921_v34, %v1920_v33 }
 0x37c   :  { %2537 = vmatprep.subr.bf16.mxu1 %v2536_v59 }
 0x37f   :  { %2539 = vmatpush3.bf16.msra.mxu1 %v2536_v59 }
 0x380   :  { %2541 = vmatprep.subr.bf16.mxu1 %v2540_v1 }
 0x383   :  { %2543 = vmatpush3.bf16.msra.mxu1 %v2540_v1 }
 0x384   :  { %2569 = vmatprep.subr.bf16.mxu1 %v2568_v42 }
 0x44d   :  { %v2278_v5 = vpop.f32.mrb[4].mxu1 }
 0x44e   :  { %v950_v7 = vadd.f32 %v2278_v5, %v1899_v4  ;;  %v931_v9 = vpop.f32.mrb[5].mxu1 }
 0x44f   :  { %v949_v12 = vadd.f32 %v1899_v4, %v931_v9 }
 0x450   :  { %vm952_vm14 = vcmp.ge.f32.partialorder %v950_v7, 0.0  ;;  %v954_v13 = vmul.f32 0.01, %v950_v7 }
 0x451   :  { %vm951_vm15 = vcmp.ge.f32.partialorder %v949_v12, 0.0  ;;  %v953_v14 = vmul.f32 0.01, %v949_v12 }
 0x452   :  { %v956_v15 = vsel %vm952_vm14, %v950_v7, %v954_v13  ;;  %v1928_v13 = vld [vmem:[%s3184_s3 + $0x130] sm:$0xff] }
 0x453   :  { %v958_v16 = vmul.f32 %v2883_v8, %v956_v15  ;;  %v955_v17 = vsel %vm951_vm15, %v949_v12, %v953_v14  ;;  %v1929_v14 = vld [vmem:[%s3184_s3 + $0x138] sm:$0xff] }
 0x454   :  { %v957_v18 = vmul.f32 %v2889_v11, %v955_v17  ;;  %v2584_v19 = vpack.c.bf16 %v1929_v14, %v1928_v13 }
 0x455   :  { %v962_v21 = vrot.slane %v958_v16, 7 }
 0x456   :  { %v961_v22 = vrot.slane %v957_v18, 7 }
 0x457   :  { %v967_v23 = vsel %vm662_vm12, %v962_v21, 0.0 }
 0x458   :  { %v987_v25 = vrot.slane %v967_v23, 1  ;;  %v1157_v26 = vrot.slane %v967_v23, 2  ;;  %v966_v27 = vsel %vm662_vm12, 0.0, %v961_v22  ;;  %v963_v28 = vsel %vm662_vm12, %v961_v22, %v962_v21  ;;  %v1931_v21 = vld [vmem:[%s3184_s3 + $0x148] sm:$0xff]  ;;  %v1942_v23 = vld [vmem:[%s3184_s3 + $0x180] sm:$0xff] }
 0x459   :  { %v984_v29 = vrot.slane %v966_v27, 1  ;;  %2306 = vmatprep.mubr.msk.f32.mxu0 %vm690_vm13, %v966_v27  ;;  %v1154_v30 = vrot.slane %v966_v27, 2  ;;  %v985_v31 = vrot.slane %v963_v28, 1  ;;  %v1155_v32 = vrot.slane %v963_v28, 2  ;;  %v1945_v27 = vld [vmem:[%s3184_s3 + $0x198] sm:$0xff] }
 0x45a   :  { %2307 = vmatmul.mubr.msk.f32.vlgmr.msra.gmra.mrb[4].mxu0 %vm690_vm13, %v963_v28  ;;  %v2588_v22 = vpack.c.bf16 %v1931_v21, %v1930_v20  ;;  %v1969_v20 = vld [vmem:[%s3184_s3 + $0x218] sm:$0xff] }
 0x45b   :  { %2559 = vmatpush3.bf16.msra.mxu0 %v2556_v3  ;;  %v986_v35 = vsel %vm65_vm0, %v984_v29, %v985_v31  ;;  %v1156_v36 = vsel %vm269_vm2, %v1154_v30, %v1155_v32  ;;  %v988_v37 = vsel %vm65_vm0, %v985_v31, %v987_v25  ;;  %v1158_v38 = vsel %vm269_vm2, %v1155_v32, %v1157_v26  ;;  %v1944_v26 = vld [vmem:[%s3184_s3 + $0x190] sm:$0xff]  ;;  %v1946_v31 = vld [vmem:[%s3184_s3 + $0x1a0] sm:$0xff]  ;;  %v1947_v32 = vld [vmem:[%s3184_s3 + $0x1a8] sm:$0xff] }
 0x45c   :  { %2291 = vmatprep.mubr.msk.f32.mxu1 %vm690_vm13, %v986_v35  ;;  %2321 = vmatprep.mubr.msk.f32.mxu0 %vm690_vm13, %v1156_v36  ;;  %v2596_v30 = vpack.c.bf16 %v1945_v27, %v1944_v26  ;;  %v2600_v34 = vpack.c.bf16 %v1947_v32, %v1946_v31  ;;  %v1973_v26 = vld [vmem:[%s3184_s3 + $0x238] sm:$0xff] }
 0x45d   :  { %2292 = vmatmul.mubr.msk.f32.vlgmr.msra.gmra.mrb[6].mxu1 %vm690_vm13, %v988_v37  ;;  %2561 = vmatprep.subr.bf16.mxu0 %v2560_v24  ;;  %v1958_v37 = vld [vmem:[%s3184_s3 + $0x1e0] sm:$0xff] }
 0x45e   :  { %2571 = vmatpush3.bf16.msra.mxu1 %v2568_v42  ;;  %v2608_v42 = vpack.c.bf16 %v1961_v41, %v1960_v40 }
 0x45f   :  { %2563 = vmatpush3.bf16.msra.mxu0 %v2560_v24  ;;  %2573 = vmatprep.subr.bf16.mxu1 %v2572_v45  ;;  %v1943_v24 = vld [vmem:[%s3184_s3 + $0x188] sm:$0xff] }
 0x460   :  { %2565 = vmatprep.subr.bf16.mxu0 %v2564_v39  ;;  %v2592_v25 = vpack.c.bf16 %v1943_v24, %v1942_v23  ;;  %v1971_v23 = vld [vmem:[%s3184_s3 + $0x228] sm:$0xff] }
 0x462   :  { %2575 = vmatpush3.bf16.msra.mxu1 %v2572_v45  ;;  %v2612_v45 = vpack.c.bf16 %v1963_v44, %v1962_v43 }
 0x463   :  { %2567 = vmatpush3.bf16.msra.mxu0 %v2564_v39  ;;  %2577 = vmatprep.subr.bf16.mxu1 %v2576_v48 }
 0x466   :  { %2322 = vmatmul.mubr.msk.f32.vlgmr.msra.gmra.mrb[4].mxu0 %vm690_vm13, %v1158_v38  ;;  %2579 = vmatpush3.bf16.msra.mxu1 %v2576_v48  ;;  %v1959_v38 = vld [vmem:[%s3184_s3 + $0x1e8] sm:$0xff]  ;;  %v2616_v48 = vpack.c.bf16 %v1953_v47, %v1952_v46 }
 0x467   :  { %2581 = vmatprep.subr.bf16.mxu1 %v2580_v51  ;;  %v2604_v39 = vpack.c.bf16 %v1959_v38, %v1958_v37 }
 0x469   :  { %2605 = vmatprep.subr.bf16.mxu0 %v2604_v39 }
 0x46a   :  { %2607 = vmatpush3.bf16.msra.mxu0 %v2604_v39 }
 0x46b   :  { %2609 = vmatprep.subr.bf16.mxu0 %v2608_v42 }
 0x46e   :  { %2611 = vmatpush3.bf16.msra.mxu0 %v2608_v42 }
 0x46f   :  { %2613 = vmatprep.subr.bf16.mxu0 %v2612_v45 }
 0x472   :  { %2615 = vmatpush3.bf16.msra.mxu0 %v2612_v45 }
 0x473   :  { %2617 = vmatprep.subr.bf16.mxu0 %v2616_v48 }
 0x530   :  { %v2293_v52 = vpop.f32.mrb[6].mxu1 }
 0x531   :  { %v1059_v53 = vpop.f32.mrb[7].mxu1 }
 0x539   :  { %v2323_v54 = vpop.f32.mrb[4].mxu0 }
 0x53a   :  { %v2640_v56 = vadd.f32 %v2323_v54, %v2293_v52  ;;  %v1229_v57 = vpop.f32.mrb[5].mxu0 }
 0x53b   :  { %v2641_v58 = vadd.f32 %v1229_v57, %v1059_v53 }
 0x53c   :  { %v1249_v59 = vadd.f32 %v2640_v56, %v1925_v55 }
 0x53d   :  { %v1248_v60 = vadd.f32 %v2641_v58, %v1925_v55 }
 0x53e   :  { %v3040_v61 = vadd.f32 %v2881_v6, %v1249_v59 }
 0x53f   :  { %v3043_v62 = vadd.f32 %v1248_v60, %v2887_v10 }
 0x540   :  { %vm1253_vm1 = vcmp.ge.f32.partialorder %v3040_v61, 0.0  ;;  %v1255_v63 = vmul.f32 0.01, %v3040_v61 }
 0x541   :  { %vm1252_vm3 = vcmp.ge.f32.partialorder %v3043_v62, 0.0  ;;  %v1254_v0 = vmul.f32 0.01, %v3043_v62 }
 0x542   :  { %v1257_v1 = vsel %vm1253_vm1, %v3040_v61, %v1255_v63 }
 0x543   :  { %v1259_v2 = vmul.f32 %v2883_v8, %v1257_v1  ;;  %v1256_v3 = vsel %vm1252_vm3, %v3043_v62, %v1254_v0  ;;  %v1954_v1 = vld [vmem:[%s3184_s3 + $0x1c0] sm:$0xff] }
 0x544   :  { %v1258_v6 = vmul.f32 %v2889_v11, %v1256_v3 }
 0x545   :  { %v1263_v4 = vrot.slane %v1259_v2, 7  ;;  %v1955_v2 = vld [vmem:[%s3184_s3 + $0x1c8] sm:$0xff] }
 0x546   :  { %v1262_v5 = vrot.slane %v1258_v6, 7 }
 0x547   :  { %v1268_v10 = vsel %vm662_vm12, %v1263_v4, 0.0 }
 0x548   :  { %v1264_v7 = vsel %vm662_vm12, %v1262_v5, %v1263_v4  ;;  %v1267_v9 = vsel %vm662_vm12, 0.0, %v1262_v5  ;;  %v1288_v12 = vrot.slane %v1268_v10, 1  ;;  %v1458_v35 = vrot.slane %v1268_v10, 2 }
 0x549   :  { %v1285_v15 = vrot.slane %v1267_v9, 1  ;;  %v1286_v16 = vrot.slane %v1264_v7, 1  ;;  %v1455_v28 = vrot.slane %v1267_v9, 2  ;;  %v1456_v29 = vrot.slane %v1264_v7, 2 }
 0x54b   :  { %v1287_v17 = vsel %vm65_vm0, %v1285_v15, %v1286_v16  ;;  %v1289_v18 = vsel %vm65_vm0, %v1286_v16, %v1288_v12  ;;  %v1457_v33 = vsel %vm269_vm2, %v1455_v28, %v1456_v29  ;;  %v1459_v36 = vsel %vm269_vm2, %v1456_v29, %v1458_v35  ;;  %v1956_v16 = vld [vmem:[%s3184_s3 + $0x1d0] sm:$0xff]  ;;  %v1977_v28 = vld [vmem:[%s3185_s4 + $0x3] ss:$0 sm:$0xff] }
 0x54c   :  { %2336 = vmatprep.mubr.msk.f32.mxu1 %vm690_vm13, %v1287_v17  ;;  %v1957_v17 = vld [vmem:[%s3184_s3 + $0x1d8] sm:$0xff] }
 0x54d   :  { %2337 = vmatmul.mubr.msk.f32.vlgmr.msra.gmra.mrb[8].mxu1 %vm690_vm13, %v1289_v18  ;;  %v2624_v18 = vpack.c.bf16 %v1957_v17, %v1956_v16 }
 0x54e   :  { %2583 = vmatpush3.bf16.msra.mxu1 %v2580_v51  ;;  %2351 = vmatprep.mubr.msk.f32.mxu1 %vm690_vm13, %v1267_v9  ;;  %v2620_v9 = vpack.c.bf16 %v1955_v2, %v1954_v1 }
 0x54f   :  { %2585 = vmatprep.subr.bf16.mxu1 %v2584_v19 }
 0x552   :  { %2587 = vmatpush3.bf16.msra.mxu1 %v2584_v19  ;;  %v1968_v19 = vld [vmem:[%s3184_s3 + $0x210] sm:$0xff] }
 0x553   :  { %2589 = vmatprep.subr.bf16.mxu1 %v2588_v22  ;;  %v2628_v21 = vpack.c.bf16 %v1969_v20, %v1968_v19 }
 0x556   :  { %2591 = vmatpush3.bf16.msra.mxu1 %v2588_v22  ;;  %v1970_v22 = vld [vmem:[%s3184_s3 + $0x220] sm:$0xff] }
 0x557   :  { %2593 = vmatprep.subr.bf16.mxu1 %v2592_v25  ;;  %v2632_v24 = vpack.c.bf16 %v1971_v23, %v1970_v22 }
 0x559   :  { %2352 = vmatmul.mubr.msk.f32.vlgmr.msra.gmra.mrb[8].mxu1 %vm690_vm13, %v1264_v7 }
 0x55a   :  { %2595 = vmatpush3.bf16.msra.mxu1 %v2592_v25  ;;  %2366 = vmatprep.mubr.msk.f32.mxu1 %vm690_vm13, %v1457_v33  ;;  %v1972_v25 = vld [vmem:[%s3184_s3 + $0x230] sm:$0xff] }
 0x55b   :  { %2597 = vmatprep.subr.bf16.mxu1 %v2596_v30  ;;  %v2636_v27 = vpack.c.bf16 %v1973_v26, %v1972_v25 }
 0x55e   :  { %2599 = vmatpush3.bf16.msra.mxu1 %v2596_v30 }
 0x55f   :  { %2601 = vmatprep.subr.bf16.mxu1 %v2600_v34 }
 0x562   :  { %2603 = vmatpush3.bf16.msra.mxu1 %v2600_v34 }
 0x565   :  { %2367 = vmatmul.mubr.msk.f32.vlgmr.msra.gmra.mrb[8].mxu1 %vm690_vm13, %v1459_v36 }
 0x638   :  { %v2368_v50 = vpop.f32.mrb[8].mxu1 }
 0x639   :  { %v1550_v51 = vadd.f32 %v2368_v50, %v1951_v49  ;;  %v1530_v52 = vpop.f32.mrb[9].mxu1 }
 0x63a   :  { %v1549_v53 = vadd.f32 %v1951_v49, %v1530_v52 }
 0x63b   :  { %vm1552_vm4 = vcmp.ge.f32.partialorder %v1550_v51, 0.0  ;;  %v1554_v54 = vmul.f32 0.01, %v1550_v51 }
 0x63c   :  { %vm1551_vm5 = vcmp.ge.f32.partialorder %v1549_v53, 0.0  ;;  %v1553_v55 = vmul.f32 0.01, %v1549_v53 }
 0x63d   :  { %v1556_v56 = vsel %vm1552_vm4, %v1550_v51, %v1554_v54 }
 0x63e   :  { %v1558_v57 = vmul.f32 %v2883_v8, %v1556_v56  ;;  %v1555_v58 = vsel %vm1551_vm5, %v1549_v53, %v1553_v55 }
 0x63f   :  { %v1557_v59 = vmul.f32 %v2889_v11, %v1555_v58 }
 0x640   :  { %v1562_v60 = vrot.slane %v1558_v57, 7 }
 0x641   :  { %v1561_v63 = vrot.slane %v1557_v59, 7 }
 0x642   :  { %v1567_v0 = vsel %vm662_vm12, %v1562_v60, 0.0 }
 0x643   :  { %v1587_v3 = vrot.slane %v1567_v0, 1  ;;  %v1757_v6 = vrot.slane %v1567_v0, 2  ;;  %v1566_v4 = vsel %vm662_vm12, 0.0, %v1561_v63  ;;  %v1563_v8 = vsel %vm662_vm12, %v1561_v63, %v1562_v60 }
 0x644   :  { %v1584_v5 = vrot.slane %v1566_v4, 1  ;;  %v1585_v11 = vrot.slane %v1563_v8, 1  ;;  %v1754_v10 = vrot.slane %v1566_v4, 2  ;;  %v1755_v7 = vrot.slane %v1563_v8, 2 }
 0x646   :  { %v1586_v12 = vsel %vm65_vm0, %v1584_v5, %v1585_v11  ;;  %v1588_v13 = vsel %vm65_vm0, %v1585_v11, %v1587_v3  ;;  %v1756_v14 = vsel %vm269_vm2, %v1754_v10, %v1755_v7  ;;  %v1758_v15 = vsel %vm269_vm2, %v1755_v7, %v1757_v6 }
 0x647   :  { %2381 = vmatprep.mubr.msk.f32.mxu0 %vm690_vm13, %v1586_v12 }
 0x648   :  { %2382 = vmatmul.mubr.msk.f32.vlgmr.msra.gmra.mrb[6].mxu0 %vm690_vm13, %v1588_v13 }
 0x649   :  { %2619 = vmatpush3.bf16.msra.mxu0 %v2616_v48  ;;  %2396 = vmatprep.mubr.msk.f32.mxu0 %vm690_vm13, %v1566_v4 }
 0x64a   :  { %2621 = vmatprep.subr.bf16.mxu0 %v2620_v9 }
 0x64d   :  { %2623 = vmatpush3.bf16.msra.mxu0 %v2620_v9 }
 0x64e   :  { %2625 = vmatprep.subr.bf16.mxu0 %v2624_v18 }
 0x651   :  { %2627 = vmatpush3.bf16.msra.mxu0 %v2624_v18 }
 0x652   :  { %2629 = vmatprep.subr.bf16.mxu0 %v2628_v21 }
 0x654   :  { %2397 = vmatmul.mubr.msk.f32.vlgmr.msra.gmra.mrb[6].mxu0 %vm690_vm13, %v1563_v8 }
 0x655   :  { %2631 = vmatpush3.bf16.msra.mxu0 %v2628_v21  ;;  %2411 = vmatprep.mubr.msk.f32.mxu0 %vm690_vm13, %v1756_v14 }
 0x656   :  { %2633 = vmatprep.subr.bf16.mxu0 %v2632_v24 }
 0x659   :  { %2635 = vmatpush3.bf16.msra.mxu0 %v2632_v24 }
 0x65a   :  { %2637 = vmatprep.subr.bf16.mxu0 %v2636_v27 }
 0x65d   :  { %2639 = vmatpush3.bf16.msra.mxu0 %v2636_v27 }
 0x660   :  { %2412 = vmatmul.mubr.msk.f32.vlgmr.msra.gmra.mrb[6].mxu0 %vm690_vm13, %v1758_v15 }
 0x733   :  { %v2413_v29 = vpop.f32.mrb[6].mxu0 }
 0x734   :  { %v1849_v30 = vadd.f32 %v2413_v29, %v1977_v28  ;;  %v1829_v31 = vpop.f32.mrb[7].mxu0 }
 0x735   :  { %v1848_v32 = vadd.f32 %v1977_v28, %v1829_v31 }
 0x736   :  { %v1851_v33 = vadd.f32 %v1849_v30, %v3040_v61 }
 0x737   :  { %v1850_v34 = vadd.f32 %v1848_v32, %v3043_v62 }
 0x738   :  { %v1853_v35 = vsel %vm690_vm13, %v1851_v33, 0.0 }
 0x739   :  { %1855 = vst [vmem:[%s3188_s7 + $0x8] sm:$0xff] %v1853_v35  ;;  %v1852_v36 = vsel %vm690_vm13, %v1850_v34, 0.0 }
 0x73a   :  { %1854 = vst [vmem:[%s3188_s7] sm:$0xff] %v1852_v36 }
 0x73b   :  { %1860 = vsyncpa [#allocation3], 1 }

</bundles_post_ra>
